<compile_context>
chip_gen: v7x
topology: tpu7x:2x2x1
jax: 0.10.0
libtpu: 0.0.40
codegen_flags: <defaults>
</compile_context>

<pallas_src>
import functools

import jax
import jax.numpy as jnp
from jax.experimental import pallas as pl
from jax.experimental.pallas import tpu as pltpu


def _qhead_kernel(x_ref, w1_ref, gb_ref, wh_ref, bh_ref, out_ref,
                  *, inv_batch, eps, slope, var_lo, var_hi):
    """Single-step fused QHead: conv1 GEMM + BN + LeakyReLU + fused heads."""
    # conv1 as one long-K GEMM: (B, 4096) bf16 @ (4096, 128) bf16 -> f32 (MXU).
    y = jnp.dot(x_ref[...], w1_ref[...], preferred_element_type=jnp.float32)

    # BatchNorm2d(128), training mode, biased batch stats (single pass).
    mean = jnp.sum(y, axis=0, keepdims=True) * inv_batch
    var = jnp.sum(y * y, axis=0, keepdims=True) * inv_batch - mean * mean
    var = jnp.maximum(var, 0.0)          # guard against cancellation
    y = (y - mean) * jax.lax.rsqrt(var + eps)
    y = y * gb_ref[0:1, :] + gb_ref[1:2, :]      # gamma / beta

    # LeakyReLU(0.1)
    y = jnp.maximum(y, slope * y)

    # Fused 1x1-conv heads: one (B,128) @ (128, Npad) matmul + bias.
    z = jnp.dot(y, wh_ref[...], preferred_element_type=jnp.float32) + bh_ref[...]

    # exp() only on the var-head lanes (lane-masked; EUP slot, essentially free).
    lane = jax.lax.broadcasted_iota(jnp.int32, z.shape, dimension=1)
    is_var = (lane >= var_lo) & (lane < var_hi)
    out_ref[...] = jnp.where(is_var, jnp.exp(z), z)


def qhead_forward(x_nchw, params):
    """QHead.forward.  x_nchw: (B, 256, 4, 4) float32 (PyTorch NCHW).

    Returns (disc_logits, mu, var) with shapes (B, dc), (B, cc), (B, cc)
    (i.e. torch .squeeze() of the (B, *, 1, 1) maps for B > 1).
    """
    B, Cin, H, W = x_nchw.shape
    assert (Cin, H, W) == (256, 4, 4), "QHead expects (B, 256, 4, 4) input"

    w1 = params["w1"]                         # (128, 256, 4, 4) PyTorch layout
    Cmid = w1.shape[0]                        # 128
    K = Cin * H * W                           # 4096

    # conv1 with no padding on a 4x4 input == one dense contraction.
    # Stream x and W1 as bf16 (the weight is the dominant HBM traffic).
    xf = x_nchw.reshape(B, K).astype(jnp.bfloat16)                        # (B, 4096)
    w1f = jnp.transpose(w1.reshape(Cmid, K), (1, 0)).astype(jnp.bfloat16)  # (4096, 128)

    # gamma / beta packed into one resident operand.
    gb = jnp.concatenate(
        [params["g1"].reshape(1, Cmid), params["b1"].reshape(1, Cmid)],
        axis=0).astype(jnp.float32)                                       # (2, 128)

    dc = params["w_disc"].shape[0]
    cc = params["w_mu"].shape[0]
    N = dc + 2 * cc
    Npad = 128 * pl.cdiv(N, 128)              # lane-dense output slab

    wh = jnp.concatenate(
        [params["w_disc"].reshape(dc, Cmid),
         params["w_mu"].reshape(cc, Cmid),
         params["w_var"].reshape(cc, Cmid)], axis=0).T.astype(jnp.float32)  # (128, N)
    bh = jnp.concatenate(
        [params["b_disc"], params["b_mu"], params["b_var"]]
    ).reshape(1, N).astype(jnp.float32)
    if Npad != N:
        wh = jnp.pad(wh, ((0, 0), (0, Npad - N)))
        bh = jnp.pad(bh, ((0, 0), (0, Npad - N)))

    kernel = functools.partial(_qhead_kernel,
                               inv_batch=1.0 / B, eps=1e-5, slope=0.1,
                               var_lo=dc + cc, var_hi=dc + 2 * cc)

    full = lambda i: (0, 0)    # single grid step: every operand is one full block

    grid_spec = pltpu.PrefetchScalarGridSpec(
        num_scalar_prefetch=0,
        grid=(1,),
        in_specs=[
            pl.BlockSpec((B, K), full),          # x       (bf16)
            pl.BlockSpec((K, Cmid), full),       # W1      (bf16)
            pl.BlockSpec((2, Cmid), full),       # gamma/beta
            pl.BlockSpec((Cmid, Npad), full),    # fused head weights
            pl.BlockSpec((1, Npad), full),       # fused head bias
        ],
        out_specs=pl.BlockSpec((B, Npad), full),
    )

    out = pl.pallas_call(
        kernel,
        grid_spec=grid_spec,
        out_shape=jax.ShapeDtypeStruct((B, Npad), jnp.float32),
        compiler_params=pltpu.CompilerParams(
            dimension_semantics=("arbitrary",)),
    )(xf, w1f, gb, wh, bh)

    disc = out[:, :dc]
    mu = out[:, dc:dc + cc]
    var = out[:, dc + cc:dc + 2 * cc]
    return disc, mu, var


def qhead_reference(x, p):
    """Pure-JAX f32 reference (matches PyTorch QHead.forward, train-mode BN)."""
    B = x.shape[0]
    xf = x.reshape(B, -1).astype(jnp.float32)
    y = xf @ p["w1"].reshape(p["w1"].shape[0], -1).T
    mean = jnp.mean(y, axis=0, keepdims=True)
    var = jnp.mean((y - mean) ** 2, axis=0, keepdims=True)
    y = (y - mean) * jax.lax.rsqrt(var + 1e-5)
    y = y * p["g1"][None, :] + p["b1"][None, :]
    y = jnp.where(y > 0, y, 0.1 * y)
    disc = y @ p["w_disc"].reshape(-1, 128).T + p["b_disc"][None, :]
    mu = y @ p["w_mu"].reshape(-1, 128).T + p["b_mu"][None, :]
    var_out = jnp.exp(y @ p["w_var"].reshape(-1, 128).T + p["b_var"][None, :])
    return disc, mu, var_out


def init_params(key, dc, cc):
    ks = jax.random.split(key, 9)

    def nrm(k, shape, scale=0.02):
        return (scale * jax.random.normal(k, shape)).astype(jnp.float32)

    return {
        "w1": nrm(ks[0], (128, 256, 4, 4)),          # Conv2d(256,128,4,bias=False)
        "g1": (1.0 + 0.1 * jax.random.normal(ks[1], (128,))).astype(jnp.float32),
        "b1": nrm(ks[2], (128,), 0.1),
        "w_disc": nrm(ks[3], (dc, 128, 1, 1)),       # Conv2d(128,dc,1)
        "b_disc": nrm(ks[4], (dc,), 0.1),
        "w_mu": nrm(ks[5], (cc, 128, 1, 1)),         # Conv2d(128,cc,1)
        "b_mu": nrm(ks[6], (cc,), 0.1),
        "w_var": nrm(ks[7], (cc, 128, 1, 1)),        # Conv2d(128,cc,1)
        "b_var": nrm(ks[8], (cc,), 0.1),
    }


if __name__ == "__main__":
    key = jax.random.PRNGKey(0)
    kx, kp = jax.random.split(key)

    # InfoGAN-style config, kept small: num_dis_c=2, dis_c_dim=5, num_con_c=2.
    batch = 2
    dc = 2 * 5      # discrete-code logits
    cc = 2          # continuous codes

    x = jax.random.normal(kx, (batch, 256, 4, 4), dtype=jnp.float32)
    params = init_params(kp, dc, cc)

    disc, mu, var = qhead_forward(x, params)
    disc, mu, var = jax.block_until_ready((disc, mu, var))

    d_ref, m_ref, v_ref = qhead_reference(x, params)

    assert disc.shape == (batch, dc), disc.shape
    assert mu.shape == (batch, cc), mu.shape
    assert var.shape == (batch, cc), var.shape
    assert bool(jnp.all(jnp.isfinite(disc)) & jnp.all(jnp.isfinite(mu))
                & jnp.all(jnp.isfinite(var)))
    # bf16 x / W1 streaming vs an f32 reference -> slightly relaxed tolerance.
    assert bool(jnp.allclose(disc, d_ref, atol=2e-2, rtol=2e-2))
    assert bool(jnp.allclose(mu, m_ref, atol=2e-2, rtol=2e-2))
    assert bool(jnp.allclose(var, v_ref, atol=2e-2, rtol=2e-2))
    assert bool(jnp.all(var > 0.0))    # exp output must be positive
    print("KERNEL_OK")
</pallas_src>

<mosaic_0001>
module attributes {stable_mosaic.version = 11 : i64} {
  func.func @_qhead_kernel(%arg0: i32, %arg1: memref<2x4096xbf16, #tpu.memory_space<vmem>>, %arg2: memref<4096x128xbf16, #tpu.memory_space<vmem>>, %arg3: memref<2x128xf32, #tpu.memory_space<vmem>>, %arg4: memref<128x128xf32, #tpu.memory_space<vmem>>, %arg5: memref<1x128xf32, #tpu.memory_space<vmem>>, %arg6: memref<2x128xf32, #tpu.memory_space<vmem>>) attributes {dimension_semantics = [#tpu.dimension_semantics<arbitrary>], iteration_bounds = array<i64: 1>, scalar_prefetch = 0 : i64, scratch_operands = 0 : i64, tpu.core_type = #tpu.core_type<tc>, window_params = [{pipeline_mode = #tpu.pipeline_mode<synchronous>, transform_indices = @transform_0, window_bounds = array<i64: 2, 4096>}, {pipeline_mode = #tpu.pipeline_mode<synchronous>, transform_indices = @transform_1, window_bounds = array<i64: 4096, 128>}, {pipeline_mode = #tpu.pipeline_mode<synchronous>, transform_indices = @transform_2, window_bounds = array<i64: 2, 128>}, {pipeline_mode = #tpu.pipeline_mode<synchronous>, transform_indices = @transform_3, window_bounds = array<i64: 128, 128>}, {pipeline_mode = #tpu.pipeline_mode<synchronous>, transform_indices = @transform_4, window_bounds = array<i64: 1, 128>}, {pipeline_mode = #tpu.pipeline_mode<synchronous>, transform_indices = @transform_5, window_bounds = array<i64: 2, 128>}]} {
    %c0 = arith.constant 0 : index
    %c0_0 = arith.constant 0 : index
    %0 = vector.load %arg1[%c0, %c0_0] : memref<2x4096xbf16, #tpu.memory_space<vmem>>, vector<2x4096xbf16>
    %c0_1 = arith.constant 0 : index
    %c0_2 = arith.constant 0 : index
    %1 = vector.load %arg2[%c0_1, %c0_2] : memref<4096x128xbf16, #tpu.memory_space<vmem>>, vector<4096x128xbf16>
    %cst = arith.constant dense<0.000000e+00> : vector<2x128xf32>
    %2 = tpu.matmul %0, %1, %cst {dimension_numbers = #tpu.dot_dimension_numbers<[1], [0], [0], [1], [0, 0, 1, 1], [], []>} : vector<2x4096xbf16>, vector<4096x128xbf16>, vector<2x128xf32> -> vector<2x128xf32>
    %cst_3 = arith.constant dense<0.000000e+00> : vector<128xf32>
    %3 = vector.multi_reduction <add>, %2, %cst_3 [0] : vector<2x128xf32> to vector<128xf32>
    %4 = vector.shape_cast %3 : vector<128xf32> to vector<1x128xf32>
    %cst_4 = arith.constant 5.000000e-01 : f32
    %5 = vector.broadcast %cst_4 : f32 to vector<1x128xf32>
    %6 = arith.mulf %4, %5 : vector<1x128xf32>
    %7 = arith.mulf %2, %2 : vector<2x128xf32>
    %cst_5 = arith.constant dense<0.000000e+00> : vector<128xf32>
    %8 = vector.multi_reduction <add>, %7, %cst_5 [0] : vector<2x128xf32> to vector<128xf32>
    %9 = vector.shape_cast %8 : vector<128xf32> to vector<1x128xf32>
    %cst_6 = arith.constant 5.000000e-01 : f32
    %10 = vector.broadcast %cst_6 : f32 to vector<1x128xf32>
    %11 = arith.mulf %9, %10 : vector<1x128xf32>
    %12 = arith.mulf %6, %6 : vector<1x128xf32>
    %13 = arith.subf %11, %12 : vector<1x128xf32>
    %cst_7 = arith.constant 0.000000e+00 : f32
    %14 = vector.broadcast %cst_7 : f32 to vector<1x128xf32>
    %15 = arith.maximumf %13, %14 : vector<1x128xf32>
    %16 = vector.broadcast %6 : vector<1x128xf32> to vector<2x128xf32>
    %17 = arith.subf %2, %16 : vector<2x128xf32>
    %cst_8 = arith.constant 9.99999974E-6 : f32
    %18 = vector.broadcast %cst_8 : f32 to vector<1x128xf32>
    %19 = arith.addf %15, %18 : vector<1x128xf32>
    %20 = math.rsqrt %19 : vector<1x128xf32>
    %21 = vector.broadcast %20 : vector<1x128xf32> to vector<2x128xf32>
    %22 = arith.mulf %17, %21 : vector<2x128xf32>
    %c0_9 = arith.constant 0 : index
    %c0_10 = arith.constant 0 : index
    %23 = vector.load %arg3[%c0_9, %c0_10] : memref<2x128xf32, #tpu.memory_space<vmem>>, vector<1x128xf32>
    %24 = vector.broadcast %23 : vector<1x128xf32> to vector<2x128xf32>
    %25 = arith.mulf %22, %24 : vector<2x128xf32>
    %c1 = arith.constant 1 : index
    %c0_11 = arith.constant 0 : index
    %26 = vector.load %arg3[%c1, %c0_11] : memref<2x128xf32, #tpu.memory_space<vmem>>, vector<1x128xf32>
    %27 = vector.broadcast %26 : vector<1x128xf32> to vector<2x128xf32>
    %28 = arith.addf %25, %27 : vector<2x128xf32>
    %cst_12 = arith.constant 1.000000e-01 : f32
    %29 = vector.broadcast %cst_12 : f32 to vector<2x128xf32>
    %30 = arith.mulf %29, %28 : vector<2x128xf32>
    %31 = arith.maximumf %28, %30 : vector<2x128xf32>
    %c0_13 = arith.constant 0 : index
    %c0_14 = arith.constant 0 : index
    %32 = vector.load %arg4[%c0_13, %c0_14] : memref<128x128xf32, #tpu.memory_space<vmem>>, vector<128x128xf32>
    %cst_15 = arith.constant dense<0.000000e+00> : vector<2x128xf32>
    %33 = tpu.matmul %31, %32, %cst_15 {dimension_numbers = #tpu.dot_dimension_numbers<[1], [0], [0], [1], [0, 0, 1, 1], [], []>} : vector<2x128xf32>, vector<128x128xf32>, vector<2x128xf32> -> vector<2x128xf32>
    %c0_16 = arith.constant 0 : index
    %c0_17 = arith.constant 0 : index
    %34 = vector.load %arg5[%c0_16, %c0_17] : memref<1x128xf32, #tpu.memory_space<vmem>>, vector<1x128xf32>
    %35 = vector.broadcast %34 : vector<1x128xf32> to vector<2x128xf32>
    %36 = arith.addf %33, %35 : vector<2x128xf32>
    %37 = tpu.iota {dimensions = array<i32: 1>} : vector<2x128xi32>
    %c12_i32 = arith.constant 12 : i32
    %38 = vector.broadcast %c12_i32 : i32 to vector<2x128xi32>
    %39 = arith.cmpi sge, %37, %38 : vector<2x128xi32>
    %c14_i32 = arith.constant 14 : i32
    %40 = vector.broadcast %c14_i32 : i32 to vector<2x128xi32>
    %41 = arith.cmpi slt, %37, %40 : vector<2x128xi32>
    %42 = arith.andi %39, %41 : vector<2x128xi1>
    %43 = math.exp %36 : vector<2x128xf32>
    %44 = arith.select %42, %43, %36 : vector<2x128xi1>, vector<2x128xf32>
    %c0_18 = arith.constant 0 : index
    %c0_19 = arith.constant 0 : index
    %45 = vector.load %arg6[%c0_18, %c0_19] : memref<2x128xf32, #tpu.memory_space<vmem>>, vector<2x128xf32>
    tpu.vector_store %arg6[%c0_18, %c0_19], %44 {strides = array<i32>} : memref<2x128xf32, #tpu.memory_space<vmem>>, vector<2x128xf32>,
    return
  }
  func.func @transform_0(%arg0: i32) -> (i32, i32) {
    %c0_i32 = arith.constant 0 : i32
    %c0_i32_0 = arith.constant 0 : i32
    %c0_i32_1 = arith.constant 0 : i32
    return %c0_i32, %c0_i32_0 : i32, i32
  }
  func.func @transform_1(%arg0: i32) -> (i32, i32) {
    %c0_i32 = arith.constant 0 : i32
    %c0_i32_0 = arith.constant 0 : i32
    %c0_i32_1 = arith.constant 0 : i32
    return %c0_i32, %c0_i32_0 : i32, i32
  }
  func.func @transform_2(%arg0: i32) -> (i32, i32) {
    %c0_i32 = arith.constant 0 : i32
    %c0_i32_0 = arith.constant 0 : i32
    %c0_i32_1 = arith.constant 0 : i32
    return %c0_i32, %c0_i32_0 : i32, i32
  }
  func.func @transform_3(%arg0: i32) -> (i32, i32) {
    %c0_i32 = arith.constant 0 : i32
    %c0_i32_0 = arith.constant 0 : i32
    %c0_i32_1 = arith.constant 0 : i32
    return %c0_i32, %c0_i32_0 : i32, i32
  }
  func.func @transform_4(%arg0: i32) -> (i32, i32) {
    %c0_i32 = arith.constant 0 : i32
    %c0_i32_0 = arith.constant 0 : i32
    %c0_i32_1 = arith.constant 0 : i32
    return %c0_i32, %c0_i32_0 : i32, i32
  }
  func.func @transform_5(%arg0: i32) -> (i32, i32) {
    %c0_i32 = arith.constant 0 : i32
    %c0_i32_0 = arith.constant 0 : i32
    %c0_i32_1 = arith.constant 0 : i32
    return %c0_i32, %c0_i32_0 : i32, i32
  }
}

</mosaic_0001>

<bundles_post_ra>
// kernel: tpu_custom_call.1
= control target key start
LH: loop header
LB: loop body
LE: loop exit
PB: predicated region body
PF: predicated region fallthrough
CT: control target
= control target key end

     0   :  { %10 = vsyncpa [#allocation3], 0  ;;  %s4346_s0 = inlined_call_operand.hbm [shape: bf16[2,4096], index: 0, kind: input, shape index: {}]   ;;  %s4347_s1 = inlined_call_operand.hbm [shape: bf16[4096,128], index: 1, kind: input, shape index: {}]   ;;  %s4348_s2 = inlined_call_operand.vmem [shape: f32[2,128], index: 2, kind: input, shape index: {}]   ;;  %s4349_s3 = inlined_call_operand.hbm [shape: f32[128,128], index: 3, kind: input, shape index: {}]   ;;  %s4350_s4 = inlined_call_operand.vmem [shape: f32[1,128], index: 4, kind: input, shape index: {}]   ;;  %s4351_s5 = inlined_call_operand.hbm [shape: f32[2,128], index: 5, kind: output, shape index: {}]  }
   0x1   :  { %11 = vsyncpa [#allocation6], 0 }
   0x2   :  { %12 = vsyncpa [#allocation4], 0  ;;  %s4199_s18 = smov [#allocation5]   ;;  %s4105_s22 = scalar_lea.hbm %s4347_s1, 32768 }
   0x3   :  { %s28_s19 = sshll.u32 %s4199_s18, 4  ;;  %p4106_p0 = scmp.ne.s32.totalorder %s4347_s1, %s4105_s22  ;;  %s29_s19 = int_to_ptr.vmem [resolvable:$true] %s28_s19 }
   0x4   :  { %p4109_p1 = scmp.lt.u32.totalorder %s4105_s22, %s4347_s1 }
   0x6   :  { %p4111_p2 = pnand %p4109_p1, %p4106_p0 }
   0x8   :  { %4114 = shalt.err (!%p4111_p2)
}
   0x9   :  { %s4115_s27 = scalar_lea.vmem %s29_s19, 32768  ;;  %p4120_p4 = scmp.lt.s32.totalorder %s29_s19, %s29_s19 }
   0xa   :  { %p4116_p3 = scmp.ne.s32.totalorder %s29_s19, %s4115_s27  ;;  %p4121_p5 = scmp.lt.s32.totalorder %s4115_s27, %s4115_s27 }
   0xc   :  { %p4122_p6 = por %p4121_p5, %p4120_p4 }
   0xe   :  { %p4123_p7 = pnand %p4122_p6, %p4116_p3 }
  0x10   :  { %4126 = shalt.err (!%p4123_p7)
}
  0x11   :  { %s4200_s28 = smov 64   ;;  %s4201_s29 = smov 4  }
  0x12   :  { %34 = dma.hbm_to_vmem [thread:$0]  %s4347_s1, 32768, %s29_s19, [#allocation6], %s4200_s28, %s4200_s28, %s4201_s29  }
  0x13   :  { %s4202_s7 = smov [#allocation2]   ;;  %s4203_s9 = smov [#allocation7]  }
  0x14   :  { %s19_s8 = sshll.u32 %s4202_s7, 4  ;;  %s42_s10 = sshll.u32 %s4203_s9, 4  ;;  %s20_s8 = int_to_ptr.vmem [resolvable:$true] %s19_s8  ;;  %s43_s10 = int_to_ptr.vmem [resolvable:$true] %s42_s10 }
  0x15   :  { %s4127_s13 = scalar_lea.hbm %s4346_s0, 512 }
  0x16   :  { %p4128_p8 = scmp.ne.s32.totalorder %s4346_s0, %s4127_s13  ;;  %p4131_p9 = scmp.lt.u32.totalorder %s4127_s13, %s4346_s0 }
  0x18   :  { %p4133_p10 = pnand %p4131_p9, %p4128_p8 }
  0x1a   :  { %4136 = shalt.err (!%p4133_p10)
}
  0x1b   :  { %s4137_s1 = scalar_lea.vmem %s20_s8, 512  ;;  %p4142_p12 = scmp.lt.s32.totalorder %s20_s8, %s20_s8 }
  0x1c   :  { %p4138_p11 = scmp.ne.s32.totalorder %s20_s8, %s4137_s1  ;;  %p4143_p13 = scmp.lt.s32.totalorder %s4137_s1, %s4137_s1 }
  0x1e   :  { %p4144_p0 = por %p4143_p13, %p4142_p12 }
  0x20   :  { %p4145_p1 = pnand %p4144_p0, %p4138_p11 }
  0x22   :  { %4148 = shalt.err (!%p4145_p1)
}
  0x23   :  { %22 = dma.hbm_to_vmem [thread:$0]  %s4346_s0, 512, %s20_s8, [#allocation3]  }
  0x24   :  { %s4149_s22 = scalar_lea.hbm %s4349_s3, 2048 }
  0x25   :  { %p4150_p2 = scmp.ne.s32.totalorder %s4349_s3, %s4149_s22  ;;  %p4153_p3 = scmp.lt.u32.totalorder %s4149_s22, %s4349_s3 }
  0x27   :  { %p4155_p4 = pnand %p4153_p3, %p4150_p2 }
  0x29   :  { %4158 = shalt.err (!%p4155_p4)
}
  0x2a   :  { %s4159_s27 = scalar_lea.vmem %s43_s10, 2048  ;;  %p4164_p6 = scmp.lt.s32.totalorder %s43_s10, %s43_s10 }
  0x2b   :  { %p4160_p5 = scmp.ne.s32.totalorder %s43_s10, %s4159_s27  ;;  %p4165_p7 = scmp.lt.s32.totalorder %s4159_s27, %s4159_s27 }
  0x2d   :  { %p4166_p8 = por %p4165_p7, %p4164_p6 }
  0x2f   :  { %p4167_p9 = pnand %p4166_p8, %p4160_p5 }
  0x31   :  { %4170 = shalt.err (!%p4167_p9)
}
  0x32   :  { %s4204_s0 = smov 128   ;;  %s4205_s28 = smov 8  }
  0x33   :  { %48 = dma.hbm_to_vmem [thread:$0]  %s4349_s3, 2048, %s43_s10, [#allocation6], %s4204_s0, %s4204_s0, %s4205_s28  }
  0x34   :  { %4193 = dma.done.wait [#allocation3], 512  }
  0x35   :  { %4194 = vsyncadd [#allocation3], 4294966784 }
  0x36   :  { %4195 = dma.done.wait [#allocation6], 34816  }
  0x37   :  { %4196 = vsyncadd [#allocation6], 4294932480  ;;  %v3841_v0 = vld [vmem:[#allocation5 + $0x40] sm:$0xff]   ;;  %v3845_v4 = vld [vmem:[#allocation5 + $0x48] sm:$0xff]   ;;  %v4206_v22 = vmov 1966171168   ;;  %v585_v24 = vlaneseq }
  0x38   :  { %v3842_v1 = vld [vmem:[#allocation5 + $0xc0] sm:$0xff]   ;;  %3401 = vmatprep.subr.bf16.mxu0 %v3841_v0  ;;  %v3846_v5 = vld [vmem:[#allocation5 + $0xc8] sm:$0xff]   ;;  %v3849_v8 = vld [vmem:[#allocation5 + $0x50] sm:$0xff]   ;;  %v583_v23 = vunpack.c.l.s4 %v4206_v22  ;;  %vm4208_vm0 = vmmov 0   ;;  %vm2985_vm1 = vcmask 1041408   ;;  %s4210_s11 = smov [#allocation8]  }
  0x39   :  { %v3843_v2 = vld [vmem:[#allocation5] sm:$0xff]   ;;  %3423 = vmatprep.subr.bf16.mxu1 %v3842_v1  ;;  %v3847_v6 = vld [vmem:[#allocation5 + $0x8] sm:$0xff]   ;;  %v3850_v9 = vld [vmem:[#allocation5 + $0xd0] sm:$0xff]   ;;  %v586_v30 = vshrl.u32 %v585_v24, 7 }
  0x3a   :  { %v3844_v3 = vld [vmem:[#allocation5 + $0x80] sm:$0xff]   ;;  %3402 = vmatpush3.bf16.msra.mxu0 %v3843_v2  ;;  %v3848_v7 = vld [vmem:[#allocation5 + $0x88] sm:$0xff]   ;;  %v3851_v10 = vld [vmem:[#allocation5 + $0x10] sm:$0xff]   ;;  %v584_v29 = vunpack.c.0.s8 %v583_v23 }
  0x3b   :  { %3424 = vmatpush3.bf16.msra.mxu1 %v3844_v3  ;;  %3403 = vmatprep.subr.bf16.mxu0 %v3845_v4  ;;  %v3852_v11 = vld [vmem:[#allocation5 + $0x90] sm:$0xff]   ;;  %v3853_v12 = vld [vmem:[#allocation5 + $0x58] sm:$0xff]   ;;  %v3857_v16 = vld [vmem:[#allocation5 + $0x60] sm:$0xff]  }
  0x3c   :  { %3425 = vmatprep.subr.bf16.mxu1 %v3846_v5  ;;  %v3854_v13 = vld [vmem:[#allocation5 + $0xd8] sm:$0xff]   ;;  %v3858_v17 = vld [vmem:[#allocation5 + $0xe0] sm:$0xff]   ;;  %v3861_v20 = vld [vmem:[#allocation5 + $0x68] sm:$0xff]   ;;  %v4278_v35 = vsub.s32 %v584_v29, %v586_v30 }
  0x3d   :  { %v3855_v14 = vld [vmem:[#allocation5 + $0x18] sm:$0xff]   ;;  %v3859_v18 = vld [vmem:[#allocation5 + $0x20] sm:$0xff]   ;;  %v3862_v21 = vld [vmem:[#allocation5 + $0xe8] sm:$0xff]  }
  0x3e   :  { %3404 = vmatpush3.bf16.msra.mxu0 %v3847_v6  ;;  %v3856_v15 = vld [vmem:[#allocation5 + $0x98] sm:$0xff]   ;;  %v3860_v19 = vld [vmem:[#allocation5 + $0xa0] sm:$0xff]   ;;  %v3863_v25 = vld [vmem:[#allocation5 + $0x28] sm:$0xff]  }
  0x3f   :  { %3426 = vmatpush3.bf16.msra.mxu1 %v3848_v7  ;;  %3405 = vmatprep.subr.bf16.mxu0 %v3849_v8  ;;  %v3864_v26 = vld [vmem:[#allocation5 + $0xa8] sm:$0xff]   ;;  %v3865_v27 = vld [vmem:[#allocation5 + $0x70] sm:$0xff]   ;;  %v3869_v33 = vld [vmem:[#allocation5 + $0x78] sm:$0xff]  }
  0x40   :  { %3427 = vmatprep.subr.bf16.mxu1 %v3850_v9  ;;  %v3866_v28 = vld [vmem:[#allocation5 + $0xf0] sm:$0xff]   ;;  %v3870_v34 = vld [vmem:[#allocation5 + $0xf8] sm:$0xff]   ;;  %v61_v38 = vld [vmem:[#allocation2] sm:$0xff] }
  0x41   :  { %v3867_v31 = vld [vmem:[#allocation5 + $0x30] sm:$0xff]   ;;  %v3871_v36 = vld [vmem:[#allocation5 + $0x38] sm:$0xff]   ;;  %v581_v39 = vcombine.high %v61_v38, %v61_v38  ;;  %v588_v40 = vrot.slane %v61_v38, %v4278_v35  ;;  %v3874_v41 = vld [vmem:[#allocation5 + $0x140] sm:$0xff]  }
  0x42   :  { %3406 = vmatpush3.bf16.msra.mxu0 %v3851_v10  ;;  %v3868_v32 = vld [vmem:[#allocation5 + $0xb0] sm:$0xff]   ;;  %v3872_v37 = vld [vmem:[#allocation5 + $0xb8] sm:$0xff]   ;;  %v3875_v42 = vld [vmem:[#allocation5 + $0x1c0] sm:$0xff]  }
  0x43   :  { %3428 = vmatpush3.bf16.msra.mxu1 %v3852_v11  ;;  %3407 = vmatprep.subr.bf16.mxu0 %v3853_v12  ;;  %v596_v43 = vcombine.high %v588_v40, %v588_v40  ;;  %v604_v44 = vrot.slane %v588_v40, %v4278_v35  ;;  %v4283_v45 = vrot.slane %v581_v39, %v4278_v35  ;;  %v3876_v46 = vld [vmem:[#allocation5 + $0x100] sm:$0xff]   ;;  %v3878_v51 = vld [vmem:[#allocation5 + $0x148] sm:$0xff]   ;;  %v3882_v58 = vld [vmem:[#allocation5 + $0x150] sm:$0xff]  }
  0x44   :  { %3429 = vmatprep.subr.bf16.mxu1 %v3854_v13  ;;  %v3877_v48 = vld [vmem:[#allocation5 + $0x180] sm:$0xff]   ;;  %v3879_v53 = vld [vmem:[#allocation5 + $0x1c8] sm:$0xff]   ;;  %v3883_v59 = vld [vmem:[#allocation5 + $0x1d0] sm:$0xff]  }
  0x45   :  { %v618_v47 = vrot.slane %v596_v43, %v4278_v35  ;;  %v597_v49 = vcombine.high %v4283_v45, %v4283_v45  ;;  %v626_v50 = vcombine.high %v604_v44, %v604_v44  ;;  %v3880_v55 = vld [vmem:[#allocation5 + $0x108] sm:$0xff]   ;;  %v3884_v60 = vld [vmem:[#allocation5 + $0x110] sm:$0xff]   ;;  %v3886_v62 = vld [vmem:[#allocation5 + $0x158] sm:$0xff]  }
  0x46   :  { %3408 = vmatpush3.bf16.msra.mxu0 %v3855_v14  ;;  %v3881_v56 = vld [vmem:[#allocation5 + $0x188] sm:$0xff]   ;;  %v3885_v61 = vld [vmem:[#allocation5 + $0x190] sm:$0xff]   ;;  %v3887_v63 = vld [vmem:[#allocation5 + $0x1d8] sm:$0xff]  }
  0x47   :  { %3430 = vmatpush3.bf16.msra.mxu1 %v3856_v15  ;;  %3409 = vmatprep.subr.bf16.mxu0 %v3857_v16  ;;  %v628_v52 = vcombine.high %v618_v47, %v618_v47  ;;  %v625_v54 = vrot.slane %v597_v49, %v4278_v35  ;;  %v3888_v0 = vld [vmem:[#allocation5 + $0x118] sm:$0xff]   ;;  %v3890_v2 = vld [vmem:[#allocation5 + $0x160] sm:$0xff]   ;;  %v3894_v6 = vld [vmem:[#allocation5 + $0x168] sm:$0xff]  }
  0x48   :  { %3431 = vmatprep.subr.bf16.mxu1 %v3858_v17  ;;  %2377 = vmatprep.mubr.bf16.mxu0 %v618_v47  ;;  %v3889_v1 = vld [vmem:[#allocation5 + $0x198] sm:$0xff]   ;;  %v3891_v3 = vld [vmem:[#allocation5 + $0x1e0] sm:$0xff]   ;;  %v3895_v7 = vld [vmem:[#allocation5 + $0x1e8] sm:$0xff]  }
  0x49   :  { %2417 = vmatprep.mubr.bf16.mxu1 %v628_v52  ;;  %v629_v57 = vcombine.high %v625_v54, %v625_v54  ;;  %v3892_v4 = vld [vmem:[#allocation5 + $0x120] sm:$0xff]   ;;  %v3896_v8 = vld [vmem:[#allocation5 + $0x128] sm:$0xff]   ;;  %v3898_v10 = vld [vmem:[#allocation5 + $0x170] sm:$0xff]  }
  0x4a   :  { %3410 = vmatpush3.bf16.msra.mxu0 %v3859_v18  ;;  %v3893_v5 = vld [vmem:[#allocation5 + $0x1a0] sm:$0xff]   ;;  %v3897_v9 = vld [vmem:[#allocation5 + $0x1a8] sm:$0xff]   ;;  %v3899_v11 = vld [vmem:[#allocation5 + $0x1f0] sm:$0xff]   ;;  %v611_v18 = vrot.slane %v4283_v45, %v4278_v35 }
  0x4b   :  { %3432 = vmatpush3.bf16.msra.mxu1 %v3860_v19  ;;  %3411 = vmatprep.subr.bf16.mxu0 %v3861_v20  ;;  %v3900_v12 = vld [vmem:[#allocation5 + $0x130] sm:$0xff]   ;;  %v3902_v14 = vld [vmem:[#allocation5 + $0x178] sm:$0xff]   ;;  %v3906_v19 = vld [vmem:[#allocation5 + $0x240] sm:$0xff]  }
  0x4c   :  { %3433 = vmatprep.subr.bf16.mxu1 %v3862_v21  ;;  %v3901_v13 = vld [vmem:[#allocation5 + $0x1b0] sm:$0xff]   ;;  %v3903_v15 = vld [vmem:[#allocation5 + $0x1f8] sm:$0xff]   ;;  %v3907_v20 = vld [vmem:[#allocation5 + $0x2c0] sm:$0xff]   ;;  %v627_v23 = vcombine.high %v611_v18, %v611_v18 }
  0x4d   :  { %v3904_v16 = vld [vmem:[#allocation5 + $0x138] sm:$0xff]   ;;  %v3908_v21 = vld [vmem:[#allocation5 + $0x200] sm:$0xff]   ;;  %v3914_v29 = vld [vmem:[#allocation5 + $0x250] sm:$0xff]  }
  0x4e   :  { %3412 = vmatpush3.bf16.msra.mxu0 %v3863_v25  ;;  %v3905_v17 = vld [vmem:[#allocation5 + $0x1b8] sm:$0xff]   ;;  %v3909_v22 = vld [vmem:[#allocation5 + $0x280] sm:$0xff]   ;;  %v3910_v25 = vld [vmem:[#allocation5 + $0x248] sm:$0xff]  }
  0x4f   :  { %3434 = vmatpush3.bf16.msra.mxu1 %v3864_v26  ;;  %3413 = vmatprep.subr.bf16.mxu0 %v3865_v27  ;;  %v3911_v26 = vld [vmem:[#allocation5 + $0x2c8] sm:$0xff]   ;;  %v3915_v30 = vld [vmem:[#allocation5 + $0x2d0] sm:$0xff]   ;;  %v3922_v38 = vld [vmem:[#allocation5 + $0x260] sm:$0xff]  }
  0x50   :  { %3435 = vmatprep.subr.bf16.mxu1 %v3866_v28  ;;  %v3912_v27 = vld [vmem:[#allocation5 + $0x208] sm:$0xff]   ;;  %v3923_v39 = vld [vmem:[#allocation5 + $0x2e0] sm:$0xff]   ;;  %v3931_v47 = vld [vmem:[#allocation5 + $0x2f0] sm:$0xff]  }
  0x51   :  { %v3913_v28 = vld [vmem:[#allocation5 + $0x288] sm:$0xff]   ;;  %v3924_v40 = vld [vmem:[#allocation5 + $0x220] sm:$0xff]   ;;  %v3933_v49 = vld [vmem:[#allocation5 + $0x2b0] sm:$0xff]  }
  0x52   :  { %3414 = vmatpush3.bf16.msra.mxu0 %v3867_v31  ;;  %v3916_v31 = vld [vmem:[#allocation5 + $0x210] sm:$0xff]   ;;  %v3927_v43 = vld [vmem:[#allocation5 + $0x2e8] sm:$0xff]   ;;  %v3936_v52 = vld [vmem:[#allocation5 + $0x238] sm:$0xff]  }
  0x53   :  { %3436 = vmatpush3.bf16.msra.mxu1 %v3868_v32  ;;  %3415 = vmatprep.subr.bf16.mxu0 %v3869_v33  ;;  %v3917_v32 = vld [vmem:[#allocation5 + $0x290] sm:$0xff]   ;;  %v3918_v33 = vld [vmem:[#allocation5 + $0x258] sm:$0xff]   ;;  %v3929_v45 = vld [vmem:[#allocation5 + $0x2a8] sm:$0xff]  }
  0x54   :  { %3437 = vmatprep.subr.bf16.mxu1 %v3870_v34  ;;  %v3919_v34 = vld [vmem:[#allocation5 + $0x2d8] sm:$0xff]  }
  0x56   :  { %3416 = vmatpush3.bf16.msra.mxu0 %v3871_v36  ;;  %v3920_v36 = vld [vmem:[#allocation5 + $0x218] sm:$0xff]  }
  0x57   :  { %3438 = vmatpush3.bf16.msra.mxu1 %v3872_v37  ;;  %3445 = vmatprep.subr.bf16.mxu0 %v3874_v41  ;;  %v3921_v37 = vld [vmem:[#allocation5 + $0x298] sm:$0xff]   ;;  %v3925_v41 = vld [vmem:[#allocation5 + $0x2a0] sm:$0xff]  }
  0x58   :  { %3467 = vmatprep.subr.bf16.mxu1 %v3875_v42  ;;  %v3926_v42 = vld [vmem:[#allocation5 + $0x268] sm:$0xff]  }
  0x59   :  { %2378 = vmatmul.mubr.bf16.vlgmr.msra.gmra.mrb[0].mxu0 %v604_v44  ;;  %v3928_v44 = vld [vmem:[#allocation5 + $0x228] sm:$0xff]  }
  0x5a   :  { %3446 = vmatpush3.bf16.msra.mxu0 %v3876_v46  ;;  %2418 = vmatmul.mubr.bf16.vlgmr.msra.gmra.mrb[0].mxu1 %v626_v50  ;;  %v3930_v46 = vld [vmem:[#allocation5 + $0x270] sm:$0xff]   ;;  %v3934_v50 = vld [vmem:[#allocation5 + $0x278] sm:$0xff]  }
  0x5b   :  { %3447 = vmatprep.subr.bf16.mxu0 %v3878_v51  ;;  %3468 = vmatpush3.bf16.msra.mxu1 %v3877_v48  ;;  %v3932_v48 = vld [vmem:[#allocation5 + $0x230] sm:$0xff]   ;;  %v3935_v51 = vld [vmem:[#allocation5 + $0x2f8] sm:$0xff]  }
  0x5c   :  { %2457 = vmatprep.mubr.bf16.mxu0 %v625_v54  ;;  %3469 = vmatprep.subr.bf16.mxu1 %v3879_v53  ;;  %v62_v53 = vld [vmem:[#allocation2 + $0x8] sm:$0xff]  ;;  %v3937_v54 = vld [vmem:[#allocation5 + $0x2b8] sm:$0xff]  }
  0x5d   :  { %2497 = vmatprep.mubr.bf16.mxu1 %v629_v57  ;;  %v3938_v57 = vld [vmem:[#allocation5 + $0x340] sm:$0xff]  }
  0x5e   :  { %3448 = vmatpush3.bf16.msra.mxu0 %v3880_v55  ;;  %v637_v55 = vrot.slane %v62_v53, %v4278_v35 }
  0x5f   :  { %3449 = vmatprep.subr.bf16.mxu0 %v3882_v58  ;;  %3470 = vmatpush3.bf16.msra.mxu1 %v3881_v56  ;;  %v630_v56 = vcombine.high %v62_v53, %v62_v53  ;;  %v3986_v53 = vld [vmem:[#allocation5 + $0x498] sm:$0xff]  }
  0x60   :  { %3471 = vmatprep.subr.bf16.mxu1 %v3883_v59  ;;  %v645_v58 = vcombine.high %v637_v55, %v637_v55  ;;  %v653_v59 = vrot.slane %v637_v55, %v4278_v35  ;;  %v3988_v55 = vld [vmem:[#allocation5 + $0x4e0] sm:$0xff]  }
  0x62   :  { %3450 = vmatpush3.bf16.msra.mxu0 %v3884_v60  ;;  %v3939_v60 = vld [vmem:[#allocation5 + $0x3c0] sm:$0xff]  }
  0x63   :  { %3451 = vmatprep.subr.bf16.mxu0 %v3886_v62  ;;  %3472 = vmatpush3.bf16.msra.mxu1 %v3885_v61  ;;  %v4294_v61 = vrot.slane %v630_v56, %v4278_v35  ;;  %v3940_v62 = vld [vmem:[#allocation5 + $0x300] sm:$0xff]  }
  0x64   :  { %3473 = vmatprep.subr.bf16.mxu1 %v3887_v63  ;;  %v667_v63 = vrot.slane %v645_v58, %v4278_v35  ;;  %v3989_v56 = vld [vmem:[#allocation5 + $0x420] sm:$0xff]   ;;  %v3991_v58 = vld [vmem:[#allocation5 + $0x468] sm:$0xff]  }
  0x66   :  { %3452 = vmatpush3.bf16.msra.mxu0 %v3888_v0  ;;  %v3941_v0 = vld [vmem:[#allocation5 + $0x380] sm:$0xff]  }
  0x67   :  { %3453 = vmatprep.subr.bf16.mxu0 %v3890_v2  ;;  %3474 = vmatpush3.bf16.msra.mxu1 %v3889_v1  ;;  %v646_v1 = vcombine.high %v4294_v61, %v4294_v61  ;;  %v675_v2 = vcombine.high %v653_v59, %v653_v59 }
  0x68   :  { %3475 = vmatprep.subr.bf16.mxu1 %v3891_v3  ;;  %v3942_v3 = vld [vmem:[#allocation5 + $0x348] sm:$0xff]  }
  0x6a   :  { %3454 = vmatpush3.bf16.msra.mxu0 %v3892_v4  ;;  %v677_v4 = vcombine.high %v667_v63, %v667_v63 }
  0x6b   :  { %3455 = vmatprep.subr.bf16.mxu0 %v3894_v6  ;;  %3476 = vmatpush3.bf16.msra.mxu1 %v3893_v5  ;;  %v3943_v5 = vld [vmem:[#allocation5 + $0x3c8] sm:$0xff]   ;;  %v674_v6 = vrot.slane %v646_v1, %v4278_v35  ;;  %v3998_v1 = vld [vmem:[#allocation5 + $0x4b0] sm:$0xff]  }
  0x6c   :  { %3477 = vmatprep.subr.bf16.mxu1 %v3895_v7  ;;  %v3944_v7 = vld [vmem:[#allocation5 + $0x308] sm:$0xff]  }
  0x6e   :  { %3456 = vmatpush3.bf16.msra.mxu0 %v3896_v8  ;;  %v3945_v8 = vld [vmem:[#allocation5 + $0x388] sm:$0xff]  }
  0x6f   :  { %3457 = vmatprep.subr.bf16.mxu0 %v3898_v10  ;;  %3478 = vmatpush3.bf16.msra.mxu1 %v3897_v9  ;;  %v678_v9 = vcombine.high %v674_v6, %v674_v6  ;;  %v3946_v10 = vld [vmem:[#allocation5 + $0x350] sm:$0xff]  }
  0x70   :  { %3479 = vmatprep.subr.bf16.mxu1 %v3899_v11  ;;  %v3947_v11 = vld [vmem:[#allocation5 + $0x3d0] sm:$0xff]  }
  0x72   :  { %3458 = vmatpush3.bf16.msra.mxu0 %v3900_v12  ;;  %v3948_v12 = vld [vmem:[#allocation5 + $0x310] sm:$0xff]  }
  0x73   :  { %3459 = vmatprep.subr.bf16.mxu0 %v3902_v14  ;;  %3480 = vmatpush3.bf16.msra.mxu1 %v3901_v13  ;;  %v3949_v13 = vld [vmem:[#allocation5 + $0x390] sm:$0xff]   ;;  %v3950_v14 = vld [vmem:[#allocation5 + $0x358] sm:$0xff]  }
  0x74   :  { %3481 = vmatprep.subr.bf16.mxu1 %v3903_v15  ;;  %v3951_v15 = vld [vmem:[#allocation5 + $0x3d8] sm:$0xff]  }
  0x76   :  { %3460 = vmatpush3.bf16.msra.mxu0 %v3904_v16  ;;  %v3952_v16 = vld [vmem:[#allocation5 + $0x318] sm:$0xff]  }
  0x77   :  { %3489 = vmatprep.subr.bf16.mxu0 %v3906_v19  ;;  %3482 = vmatpush3.bf16.msra.mxu1 %v3905_v17  ;;  %v3953_v17 = vld [vmem:[#allocation5 + $0x398] sm:$0xff]   ;;  %v3955_v19 = vld [vmem:[#allocation5 + $0x3e0] sm:$0xff]  }
  0x78   :  { %3511 = vmatprep.subr.bf16.mxu1 %v3907_v20  ;;  %v3956_v20 = vld [vmem:[#allocation5 + $0x320] sm:$0xff]  }
  0x79   :  { %2458 = vmatmul.mubr.bf16.vlgmr.msra.gmra.mrb[4].mxu0 %v611_v18  ;;  %v3954_v18 = vld [vmem:[#allocation5 + $0x360] sm:$0xff]  }
  0x7a   :  { %3490 = vmatpush3.bf16.msra.mxu0 %v3908_v21  ;;  %2498 = vmatmul.mubr.bf16.vlgmr.msra.gmra.mrb[4].mxu1 %v627_v23  ;;  %v3957_v21 = vld [vmem:[#allocation5 + $0x3a0] sm:$0xff]   ;;  %v3959_v23 = vld [vmem:[#allocation5 + $0x3e8] sm:$0xff]  }
  0x7b   :  { %3491 = vmatprep.subr.bf16.mxu0 %v3910_v25  ;;  %3512 = vmatpush3.bf16.msra.mxu1 %v3909_v22  ;;  %v3958_v22 = vld [vmem:[#allocation5 + $0x368] sm:$0xff]  }
  0x7c   :  { %3513 = vmatprep.subr.bf16.mxu1 %v3911_v26  ;;  %2537 = vmatprep.mubr.bf16.mxu0 %v667_v63  ;;  %v3960_v25 = vld [vmem:[#allocation5 + $0x328] sm:$0xff]   ;;  %v3996_v63 = vld [vmem:[#allocation5 + $0x4f0] sm:$0xff]  }
  0x7d   :  { %2577 = vmatprep.mubr.bf16.mxu1 %v677_v4  ;;  %v3961_v26 = vld [vmem:[#allocation5 + $0x3a8] sm:$0xff]   ;;  %v4001_v4 = vld [vmem:[#allocation5 + $0x438] sm:$0xff]  }
  0x7e   :  { %3492 = vmatpush3.bf16.msra.mxu0 %v3912_v27  ;;  %v3962_v27 = vld [vmem:[#allocation5 + $0x370] sm:$0xff]  }
  0x7f   :  { %3493 = vmatprep.subr.bf16.mxu0 %v3914_v29  ;;  %3514 = vmatpush3.bf16.msra.mxu1 %v3913_v28  ;;  %v3963_v28 = vld [vmem:[#allocation5 + $0x3f0] sm:$0xff]  }
  0x80   :  { %3515 = vmatprep.subr.bf16.mxu1 %v3915_v30  ;;  %v3964_v29 = vld [vmem:[#allocation5 + $0x330] sm:$0xff]  }
  0x81   :  { %v3965_v30 = vld [vmem:[#allocation5 + $0x3b0] sm:$0xff]  }
  0x82   :  { %3494 = vmatpush3.bf16.msra.mxu0 %v3916_v31  ;;  %v3966_v31 = vld [vmem:[#allocation5 + $0x378] sm:$0xff]  }
  0x83   :  { %3495 = vmatprep.subr.bf16.mxu0 %v3918_v33  ;;  %3516 = vmatpush3.bf16.msra.mxu1 %v3917_v32  ;;  %v3967_v32 = vld [vmem:[#allocation5 + $0x3f8] sm:$0xff]  }
  0x84   :  { %3517 = vmatprep.subr.bf16.mxu1 %v3919_v34  ;;  %v3968_v33 = vld [vmem:[#allocation5 + $0x338] sm:$0xff]  }
  0x85   :  { %v3969_v34 = vld [vmem:[#allocation5 + $0x3b8] sm:$0xff]  }
  0x86   :  { %3496 = vmatpush3.bf16.msra.mxu0 %v3920_v36  ;;  %v660_v36 = vrot.slane %v4294_v61, %v4278_v35  ;;  %v3994_v61 = vld [vmem:[#allocation5 + $0x4a8] sm:$0xff]  }
  0x87   :  { %3497 = vmatprep.subr.bf16.mxu0 %v3922_v38  ;;  %3518 = vmatpush3.bf16.msra.mxu1 %v3921_v37  ;;  %v3971_v37 = vld [vmem:[#allocation5 + $0x440] sm:$0xff]  }
  0x88   :  { %3519 = vmatprep.subr.bf16.mxu1 %v3923_v39  ;;  %v3972_v38 = vld [vmem:[#allocation5 + $0x4c0] sm:$0xff]  }
  0x89   :  { %v3973_v39 = vld [vmem:[#allocation5 + $0x400] sm:$0xff]  }
  0x8a   :  { %3498 = vmatpush3.bf16.msra.mxu0 %v3924_v40  ;;  %v3974_v40 = vld [vmem:[#allocation5 + $0x480] sm:$0xff]  }
  0x8b   :  { %3499 = vmatprep.subr.bf16.mxu0 %v3926_v42  ;;  %3520 = vmatpush3.bf16.msra.mxu1 %v3925_v41  ;;  %v676_v41 = vcombine.high %v660_v36, %v660_v36  ;;  %v3975_v42 = vld [vmem:[#allocation5 + $0x448] sm:$0xff]  }
  0x8c   :  { %3521 = vmatprep.subr.bf16.mxu1 %v3927_v43  ;;  %v3976_v43 = vld [vmem:[#allocation5 + $0x4c8] sm:$0xff]  }
  0x8e   :  { %3500 = vmatpush3.bf16.msra.mxu0 %v3928_v44  ;;  %v3977_v44 = vld [vmem:[#allocation5 + $0x408] sm:$0xff]  }
  0x8f   :  { %3501 = vmatprep.subr.bf16.mxu0 %v3930_v46  ;;  %3522 = vmatpush3.bf16.msra.mxu1 %v3929_v45  ;;  %v3978_v45 = vld [vmem:[#allocation5 + $0x488] sm:$0xff]   ;;  %v3979_v46 = vld [vmem:[#allocation5 + $0x450] sm:$0xff]  }
  0x90   :  { %3523 = vmatprep.subr.bf16.mxu1 %v3931_v47  ;;  %v3980_v47 = vld [vmem:[#allocation5 + $0x4d0] sm:$0xff]  }
  0x92   :  { %3502 = vmatpush3.bf16.msra.mxu0 %v3932_v48  ;;  %v3981_v48 = vld [vmem:[#allocation5 + $0x410] sm:$0xff]  }
  0x93   :  { %3503 = vmatprep.subr.bf16.mxu0 %v3934_v50  ;;  %3524 = vmatpush3.bf16.msra.mxu1 %v3933_v49  ;;  %v3982_v49 = vld [vmem:[#allocation5 + $0x490] sm:$0xff]   ;;  %v3983_v50 = vld [vmem:[#allocation5 + $0x458] sm:$0xff]  }
  0x94   :  { %3525 = vmatprep.subr.bf16.mxu1 %v3935_v51  ;;  %v3984_v51 = vld [vmem:[#allocation5 + $0x4d8] sm:$0xff]  }
  0x96   :  { %3504 = vmatpush3.bf16.msra.mxu0 %v3936_v52  ;;  %v3985_v52 = vld [vmem:[#allocation5 + $0x418] sm:$0xff]  }
  0x97   :  { %3533 = vmatprep.subr.bf16.mxu0 %v3938_v57  ;;  %3526 = vmatpush3.bf16.msra.mxu1 %v3937_v54  ;;  %v3987_v54 = vld [vmem:[#allocation5 + $0x460] sm:$0xff]  }
  0x98   :  { %3555 = vmatprep.subr.bf16.mxu1 %v3939_v60  ;;  %v3990_v57 = vld [vmem:[#allocation5 + $0x4a0] sm:$0xff]   ;;  %v3993_v60 = vld [vmem:[#allocation5 + $0x428] sm:$0xff]  }
  0x99   :  { %2538 = vmatmul.mubr.bf16.vlgmr.msra.gmra.mrb[8].mxu0 %v653_v59  ;;  %v3992_v59 = vld [vmem:[#allocation5 + $0x4e8] sm:$0xff]  }
  0x9a   :  { %3534 = vmatpush3.bf16.msra.mxu0 %v3940_v62  ;;  %2578 = vmatmul.mubr.bf16.vlgmr.msra.gmra.mrb[8].mxu1 %v675_v2  ;;  %v3995_v62 = vld [vmem:[#allocation5 + $0x470] sm:$0xff]   ;;  %v3999_v2 = vld [vmem:[#allocation5 + $0x478] sm:$0xff]  }
  0x9b   :  { %3535 = vmatprep.subr.bf16.mxu0 %v3942_v3  ;;  %3556 = vmatpush3.bf16.msra.mxu1 %v3941_v0  ;;  %v3997_v0 = vld [vmem:[#allocation5 + $0x430] sm:$0xff]   ;;  %v4000_v3 = vld [vmem:[#allocation5 + $0x4f8] sm:$0xff]  }
  0x9c   :  { %2617 = vmatprep.mubr.bf16.mxu0 %v674_v6  ;;  %3557 = vmatprep.subr.bf16.mxu1 %v3943_v5  ;;  %v63_v5 = vld [vmem:[#allocation2 + $0x10] sm:$0xff]  ;;  %v4002_v6 = vld [vmem:[#allocation5 + $0x4b8] sm:$0xff]  }
  0x9d   :  { %2657 = vmatprep.mubr.bf16.mxu1 %v678_v9  ;;  %v4003_v9 = vld [vmem:[#allocation5 + $0x540] sm:$0xff]  }
  0x9e   :  { %3536 = vmatpush3.bf16.msra.mxu0 %v3944_v7  ;;  %v686_v7 = vrot.slane %v63_v5, %v4278_v35 }
  0x9f   :  { %3537 = vmatprep.subr.bf16.mxu0 %v3946_v10  ;;  %3558 = vmatpush3.bf16.msra.mxu1 %v3945_v8  ;;  %v679_v8 = vcombine.high %v63_v5, %v63_v5  ;;  %v4051_v5 = vld [vmem:[#allocation5 + $0x698] sm:$0xff]  }
  0xa0   :  { %3559 = vmatprep.subr.bf16.mxu1 %v3947_v11  ;;  %v694_v10 = vcombine.high %v686_v7, %v686_v7  ;;  %v702_v11 = vrot.slane %v686_v7, %v4278_v35  ;;  %v4053_v7 = vld [vmem:[#allocation5 + $0x6e0] sm:$0xff]  }
  0xa2   :  { %3538 = vmatpush3.bf16.msra.mxu0 %v3948_v12  ;;  %v4004_v12 = vld [vmem:[#allocation5 + $0x5c0] sm:$0xff]  }
  0xa3   :  { %3539 = vmatprep.subr.bf16.mxu0 %v3950_v14  ;;  %3560 = vmatpush3.bf16.msra.mxu1 %v3949_v13  ;;  %v4305_v13 = vrot.slane %v679_v8, %v4278_v35  ;;  %v4005_v14 = vld [vmem:[#allocation5 + $0x500] sm:$0xff]  }
  0xa4   :  { %3561 = vmatprep.subr.bf16.mxu1 %v3951_v15  ;;  %v716_v15 = vrot.slane %v694_v10, %v4278_v35  ;;  %v4054_v8 = vld [vmem:[#allocation5 + $0x620] sm:$0xff]   ;;  %v4056_v10 = vld [vmem:[#allocation5 + $0x668] sm:$0xff]  }
  0xa6   :  { %3540 = vmatpush3.bf16.msra.mxu0 %v3952_v16  ;;  %v4006_v16 = vld [vmem:[#allocation5 + $0x580] sm:$0xff]  }
  0xa7   :  { %3541 = vmatprep.subr.bf16.mxu0 %v3954_v18  ;;  %3562 = vmatpush3.bf16.msra.mxu1 %v3953_v17  ;;  %v695_v17 = vcombine.high %v4305_v13, %v4305_v13  ;;  %v724_v18 = vcombine.high %v702_v11, %v702_v11 }
  0xa8   :  { %3563 = vmatprep.subr.bf16.mxu1 %v3955_v19  ;;  %v4007_v19 = vld [vmem:[#allocation5 + $0x548] sm:$0xff]  }
  0xaa   :  { %3542 = vmatpush3.bf16.msra.mxu0 %v3956_v20  ;;  %v726_v20 = vcombine.high %v716_v15, %v716_v15 }
  0xab   :  { %3543 = vmatprep.subr.bf16.mxu0 %v3958_v22  ;;  %3564 = vmatpush3.bf16.msra.mxu1 %v3957_v21  ;;  %v4008_v21 = vld [vmem:[#allocation5 + $0x5c8] sm:$0xff]   ;;  %v723_v22 = vrot.slane %v695_v17, %v4278_v35  ;;  %v4063_v17 = vld [vmem:[#allocation5 + $0x6b0] sm:$0xff]  }
  0xac   :  { %3565 = vmatprep.subr.bf16.mxu1 %v3959_v23  ;;  %v4009_v23 = vld [vmem:[#allocation5 + $0x508] sm:$0xff]  }
  0xae   :  { %3544 = vmatpush3.bf16.msra.mxu0 %v3960_v25  ;;  %v4010_v25 = vld [vmem:[#allocation5 + $0x588] sm:$0xff]  }
  0xaf   :  { %3545 = vmatprep.subr.bf16.mxu0 %v3962_v27  ;;  %3566 = vmatpush3.bf16.msra.mxu1 %v3961_v26  ;;  %v727_v26 = vcombine.high %v723_v22, %v723_v22  ;;  %v4011_v27 = vld [vmem:[#allocation5 + $0x550] sm:$0xff]  }
  0xb0   :  { %3567 = vmatprep.subr.bf16.mxu1 %v3963_v28  ;;  %v4012_v28 = vld [vmem:[#allocation5 + $0x5d0] sm:$0xff]  }
  0xb2   :  { %3546 = vmatpush3.bf16.msra.mxu0 %v3964_v29  ;;  %v4013_v29 = vld [vmem:[#allocation5 + $0x510] sm:$0xff]  }
  0xb3   :  { %3547 = vmatprep.subr.bf16.mxu0 %v3966_v31  ;;  %3568 = vmatpush3.bf16.msra.mxu1 %v3965_v30  ;;  %v4014_v30 = vld [vmem:[#allocation5 + $0x590] sm:$0xff]   ;;  %v4015_v31 = vld [vmem:[#allocation5 + $0x558] sm:$0xff]  }
  0xb4   :  { %3569 = vmatprep.subr.bf16.mxu1 %v3967_v32  ;;  %v4016_v32 = vld [vmem:[#allocation5 + $0x5d8] sm:$0xff]  }
  0xb6   :  { %3548 = vmatpush3.bf16.msra.mxu0 %v3968_v33  ;;  %v4017_v33 = vld [vmem:[#allocation5 + $0x518] sm:$0xff]  }
  0xb7   :  { %3577 = vmatprep.subr.bf16.mxu0 %v3971_v37  ;;  %3570 = vmatpush3.bf16.msra.mxu1 %v3969_v34  ;;  %v4018_v34 = vld [vmem:[#allocation5 + $0x598] sm:$0xff]   ;;  %v4020_v37 = vld [vmem:[#allocation5 + $0x5e0] sm:$0xff]  }
  0xb8   :  { %3599 = vmatprep.subr.bf16.mxu1 %v3972_v38  ;;  %v4021_v38 = vld [vmem:[#allocation5 + $0x520] sm:$0xff]  }
  0xb9   :  { %2618 = vmatmul.mubr.bf16.vlgmr.msra.gmra.mrb[12].mxu0 %v660_v36  ;;  %v4019_v36 = vld [vmem:[#allocation5 + $0x560] sm:$0xff]  }
  0xba   :  { %3578 = vmatpush3.bf16.msra.mxu0 %v3973_v39  ;;  %2658 = vmatmul.mubr.bf16.vlgmr.msra.gmra.mrb[12].mxu1 %v676_v41  ;;  %v4022_v39 = vld [vmem:[#allocation5 + $0x5a0] sm:$0xff]   ;;  %v4024_v41 = vld [vmem:[#allocation5 + $0x5e8] sm:$0xff]  }
  0xbb   :  { %3579 = vmatprep.subr.bf16.mxu0 %v3975_v42  ;;  %3600 = vmatpush3.bf16.msra.mxu1 %v3974_v40  ;;  %v4023_v40 = vld [vmem:[#allocation5 + $0x568] sm:$0xff]  }
  0xbc   :  { %3601 = vmatprep.subr.bf16.mxu1 %v3976_v43  ;;  %2697 = vmatprep.mubr.bf16.mxu0 %v716_v15  ;;  %v4025_v42 = vld [vmem:[#allocation5 + $0x528] sm:$0xff]   ;;  %v4061_v15 = vld [vmem:[#allocation5 + $0x6f0] sm:$0xff]  }
  0xbd   :  { %2737 = vmatprep.mubr.bf16.mxu1 %v726_v20  ;;  %v4026_v43 = vld [vmem:[#allocation5 + $0x5a8] sm:$0xff]   ;;  %v4066_v20 = vld [vmem:[#allocation5 + $0x638] sm:$0xff]  }
  0xbe   :  { %3580 = vmatpush3.bf16.msra.mxu0 %v3977_v44  ;;  %v4027_v44 = vld [vmem:[#allocation5 + $0x570] sm:$0xff]  }
  0xbf   :  { %3581 = vmatprep.subr.bf16.mxu0 %v3979_v46  ;;  %3602 = vmatpush3.bf16.msra.mxu1 %v3978_v45  ;;  %v4028_v45 = vld [vmem:[#allocation5 + $0x5f0] sm:$0xff]  }
  0xc0   :  { %3603 = vmatprep.subr.bf16.mxu1 %v3980_v47  ;;  %v4029_v46 = vld [vmem:[#allocation5 + $0x530] sm:$0xff]  }
  0xc1   :  { %v4030_v47 = vld [vmem:[#allocation5 + $0x5b0] sm:$0xff]  }
  0xc2   :  { %3582 = vmatpush3.bf16.msra.mxu0 %v3981_v48  ;;  %v4031_v48 = vld [vmem:[#allocation5 + $0x578] sm:$0xff]  }
  0xc3   :  { %3583 = vmatprep.subr.bf16.mxu0 %v3983_v50  ;;  %3604 = vmatpush3.bf16.msra.mxu1 %v3982_v49  ;;  %v4032_v49 = vld [vmem:[#allocation5 + $0x5f8] sm:$0xff]  }
  0xc4   :  { %3605 = vmatprep.subr.bf16.mxu1 %v3984_v51  ;;  %v4033_v50 = vld [vmem:[#allocation5 + $0x538] sm:$0xff]  }
  0xc5   :  { %v4034_v51 = vld [vmem:[#allocation5 + $0x5b8] sm:$0xff]  }
  0xc6   :  { %3584 = vmatpush3.bf16.msra.mxu0 %v3985_v52  ;;  %v709_v52 = vrot.slane %v4305_v13, %v4278_v35  ;;  %v4059_v13 = vld [vmem:[#allocation5 + $0x6a8] sm:$0xff]  }
  0xc7   :  { %3585 = vmatprep.subr.bf16.mxu0 %v3987_v54  ;;  %3606 = vmatpush3.bf16.msra.mxu1 %v3986_v53  ;;  %v4036_v53 = vld [vmem:[#allocation5 + $0x640] sm:$0xff]  }
  0xc8   :  { %3607 = vmatprep.subr.bf16.mxu1 %v3988_v55  ;;  %v4037_v54 = vld [vmem:[#allocation5 + $0x6c0] sm:$0xff]  }
  0xc9   :  { %v4038_v55 = vld [vmem:[#allocation5 + $0x600] sm:$0xff]  }
  0xca   :  { %3586 = vmatpush3.bf16.msra.mxu0 %v3989_v56  ;;  %v4039_v56 = vld [vmem:[#allocation5 + $0x680] sm:$0xff]  }
  0xcb   :  { %3587 = vmatprep.subr.bf16.mxu0 %v3991_v58  ;;  %3608 = vmatpush3.bf16.msra.mxu1 %v3990_v57  ;;  %v725_v57 = vcombine.high %v709_v52, %v709_v52  ;;  %v4040_v58 = vld [vmem:[#allocation5 + $0x648] sm:$0xff]  }
  0xcc   :  { %3609 = vmatprep.subr.bf16.mxu1 %v3992_v59  ;;  %v4041_v59 = vld [vmem:[#allocation5 + $0x6c8] sm:$0xff]  }
  0xce   :  { %3588 = vmatpush3.bf16.msra.mxu0 %v3993_v60  ;;  %v4042_v60 = vld [vmem:[#allocation5 + $0x608] sm:$0xff]  }
  0xcf   :  { %3589 = vmatprep.subr.bf16.mxu0 %v3995_v62  ;;  %3610 = vmatpush3.bf16.msra.mxu1 %v3994_v61  ;;  %v4043_v61 = vld [vmem:[#allocation5 + $0x688] sm:$0xff]   ;;  %v4044_v62 = vld [vmem:[#allocation5 + $0x650] sm:$0xff]  }
  0xd0   :  { %3611 = vmatprep.subr.bf16.mxu1 %v3996_v63  ;;  %v4045_v63 = vld [vmem:[#allocation5 + $0x6d0] sm:$0xff]  }
  0xd2   :  { %3590 = vmatpush3.bf16.msra.mxu0 %v3997_v0  ;;  %v4046_v0 = vld [vmem:[#allocation5 + $0x610] sm:$0xff]  }
  0xd3   :  { %3591 = vmatprep.subr.bf16.mxu0 %v3999_v2  ;;  %3612 = vmatpush3.bf16.msra.mxu1 %v3998_v1  ;;  %v4047_v1 = vld [vmem:[#allocation5 + $0x690] sm:$0xff]   ;;  %v4048_v2 = vld [vmem:[#allocation5 + $0x658] sm:$0xff]  }
  0xd4   :  { %3613 = vmatprep.subr.bf16.mxu1 %v4000_v3  ;;  %v4049_v3 = vld [vmem:[#allocation5 + $0x6d8] sm:$0xff]  }
  0xd6   :  { %3592 = vmatpush3.bf16.msra.mxu0 %v4001_v4  ;;  %v4050_v4 = vld [vmem:[#allocation5 + $0x618] sm:$0xff]  }
  0xd7   :  { %3621 = vmatprep.subr.bf16.mxu0 %v4003_v9  ;;  %3614 = vmatpush3.bf16.msra.mxu1 %v4002_v6  ;;  %v4052_v6 = vld [vmem:[#allocation5 + $0x660] sm:$0xff]  }
  0xd8   :  { %3643 = vmatprep.subr.bf16.mxu1 %v4004_v12  ;;  %v4055_v9 = vld [vmem:[#allocation5 + $0x6a0] sm:$0xff]   ;;  %v4058_v12 = vld [vmem:[#allocation5 + $0x628] sm:$0xff]  }
  0xd9   :  { %2698 = vmatmul.mubr.bf16.vlgmr.msra.gmra.mrb[16].mxu0 %v702_v11  ;;  %v4057_v11 = vld [vmem:[#allocation5 + $0x6e8] sm:$0xff]  }
  0xda   :  { %3622 = vmatpush3.bf16.msra.mxu0 %v4005_v14  ;;  %2738 = vmatmul.mubr.bf16.vlgmr.msra.gmra.mrb[16].mxu1 %v724_v18  ;;  %v4060_v14 = vld [vmem:[#allocation5 + $0x670] sm:$0xff]   ;;  %v4064_v18 = vld [vmem:[#allocation5 + $0x678] sm:$0xff]  }
  0xdb   :  { %3623 = vmatprep.subr.bf16.mxu0 %v4007_v19  ;;  %3644 = vmatpush3.bf16.msra.mxu1 %v4006_v16  ;;  %v4062_v16 = vld [vmem:[#allocation5 + $0x630] sm:$0xff]   ;;  %v4065_v19 = vld [vmem:[#allocation5 + $0x6f8] sm:$0xff]  }
  0xdc   :  { %2777 = vmatprep.mubr.bf16.mxu0 %v723_v22  ;;  %3645 = vmatprep.subr.bf16.mxu1 %v4008_v21  ;;  %v64_v21 = vld [vmem:[#allocation2 + $0x18] sm:$0xff] }
  0xdd   :  { %2817 = vmatprep.mubr.bf16.mxu1 %v727_v26  ;;  %v735_v22 = vrot.slane %v64_v21, %v4278_v35  ;;  %v4067_v26 = vld [vmem:[#allocation5 + $0x6b8] sm:$0xff]  }
  0xde   :  { %3624 = vmatpush3.bf16.msra.mxu0 %v4009_v23  ;;  %v4068_v23 = vld [vmem:[#allocation5 + $0x740] sm:$0xff]  }
  0xdf   :  { %3625 = vmatprep.subr.bf16.mxu0 %v4011_v27  ;;  %3646 = vmatpush3.bf16.msra.mxu1 %v4010_v25  ;;  %v728_v25 = vcombine.high %v64_v21, %v64_v21  ;;  %v743_v27 = vcombine.high %v735_v22, %v735_v22 }
  0xe0   :  { %3647 = vmatprep.subr.bf16.mxu1 %v4012_v28  ;;  %v751_v28 = vrot.slane %v735_v22, %v4278_v35 }
  0xe2   :  { %3626 = vmatpush3.bf16.msra.mxu0 %v4013_v29  ;;  %v4069_v29 = vld [vmem:[#allocation5 + $0x7c0] sm:$0xff]  }
  0xe3   :  { %3627 = vmatprep.subr.bf16.mxu0 %v4015_v31  ;;  %3648 = vmatpush3.bf16.msra.mxu1 %v4014_v30  ;;  %v4316_v30 = vrot.slane %v728_v25, %v4278_v35  ;;  %v765_v31 = vrot.slane %v743_v27, %v4278_v35 }
  0xe4   :  { %3649 = vmatprep.subr.bf16.mxu1 %v4016_v32  ;;  %v4070_v32 = vld [vmem:[#allocation5 + $0x700] sm:$0xff]  }
  0xe6   :  { %3628 = vmatpush3.bf16.msra.mxu0 %v4017_v33  ;;  %v744_v33 = vcombine.high %v4316_v30, %v4316_v30 }
  0xe7   :  { %3629 = vmatprep.subr.bf16.mxu0 %v4019_v36  ;;  %3650 = vmatpush3.bf16.msra.mxu1 %v4018_v34  ;;  %v773_v34 = vcombine.high %v751_v28, %v751_v28  ;;  %v4072_v36 = vld [vmem:[#allocation5 + $0x748] sm:$0xff]  }
  0xe8   :  { %3651 = vmatprep.subr.bf16.mxu1 %v4020_v37  ;;  %v775_v37 = vcombine.high %v765_v31, %v765_v31 }
  0xea   :  { %3630 = vmatpush3.bf16.msra.mxu0 %v4021_v38  ;;  %v4071_v38 = vld [vmem:[#allocation5 + $0x780] sm:$0xff]  }
  0xeb   :  { %3631 = vmatprep.subr.bf16.mxu0 %v4023_v40  ;;  %3652 = vmatpush3.bf16.msra.mxu1 %v4022_v39  ;;  %v772_v39 = vrot.slane %v744_v33, %v4278_v35  ;;  %v4073_v40 = vld [vmem:[#allocation5 + $0x7c8] sm:$0xff]  }
  0xec   :  { %3653 = vmatprep.subr.bf16.mxu1 %v4024_v41  ;;  %v4074_v41 = vld [vmem:[#allocation5 + $0x708] sm:$0xff]  }
  0xee   :  { %3632 = vmatpush3.bf16.msra.mxu0 %v4025_v42  ;;  %v776_v42 = vcombine.high %v772_v39, %v772_v39 }
  0xef   :  { %3633 = vmatprep.subr.bf16.mxu0 %v4027_v44  ;;  %3654 = vmatpush3.bf16.msra.mxu1 %v4026_v43  ;;  %v4076_v43 = vld [vmem:[#allocation5 + $0x750] sm:$0xff]   ;;  %v4075_v44 = vld [vmem:[#allocation5 + $0x788] sm:$0xff]  }
  0xf0   :  { %3655 = vmatprep.subr.bf16.mxu1 %v4028_v45  ;;  %v4077_v45 = vld [vmem:[#allocation5 + $0x7d0] sm:$0xff]  }
  0xf2   :  { %3634 = vmatpush3.bf16.msra.mxu0 %v4029_v46  ;;  %v4078_v46 = vld [vmem:[#allocation5 + $0x710] sm:$0xff]  }
  0xf3   :  { %3635 = vmatprep.subr.bf16.mxu0 %v4031_v48  ;;  %3656 = vmatpush3.bf16.msra.mxu1 %v4030_v47  ;;  %v4080_v47 = vld [vmem:[#allocation5 + $0x758] sm:$0xff]   ;;  %v4079_v48 = vld [vmem:[#allocation5 + $0x790] sm:$0xff]  }
  0xf4   :  { %3657 = vmatprep.subr.bf16.mxu1 %v4032_v49  ;;  %v4081_v49 = vld [vmem:[#allocation5 + $0x7d8] sm:$0xff]  }
  0xf6   :  { %3636 = vmatpush3.bf16.msra.mxu0 %v4033_v50  ;;  %v4082_v50 = vld [vmem:[#allocation5 + $0x718] sm:$0xff]  }
  0xf7   :  { %3665 = vmatprep.subr.bf16.mxu0 %v4036_v53  ;;  %3658 = vmatpush3.bf16.msra.mxu1 %v4034_v51  ;;  %v4084_v51 = vld [vmem:[#allocation5 + $0x760] sm:$0xff]  }
  0xf8   :  { %3687 = vmatprep.subr.bf16.mxu1 %v4037_v54  ;;  %v4085_v53 = vld [vmem:[#allocation5 + $0x7e0] sm:$0xff]  }
  0xf9   :  { %2778 = vmatmul.mubr.bf16.vlgmr.msra.gmra.mrb[20].mxu0 %v709_v52  ;;  %v4083_v52 = vld [vmem:[#allocation5 + $0x798] sm:$0xff]   ;;  %v4086_v54 = vld [vmem:[#allocation5 + $0x720] sm:$0xff]  }
  0xfa   :  { %3666 = vmatpush3.bf16.msra.mxu0 %v4038_v55  ;;  %2818 = vmatmul.mubr.bf16.vlgmr.msra.gmra.mrb[20].mxu1 %v725_v57  ;;  %v4088_v55 = vld [vmem:[#allocation5 + $0x768] sm:$0xff]  }
  0xfb   :  { %3667 = vmatprep.subr.bf16.mxu0 %v4040_v58  ;;  %3688 = vmatpush3.bf16.msra.mxu1 %v4039_v56  ;;  %v4087_v56 = vld [vmem:[#allocation5 + $0x7a0] sm:$0xff]   ;;  %v4089_v57 = vld [vmem:[#allocation5 + $0x7e8] sm:$0xff]  }
  0xfc   :  { %3689 = vmatprep.subr.bf16.mxu1 %v4041_v59  ;;  %2857 = vmatprep.mubr.bf16.mxu0 %v765_v31  ;;  %v4090_v58 = vld [vmem:[#allocation5 + $0x728] sm:$0xff]  }
  0xfd   :  { %2897 = vmatprep.mubr.bf16.mxu1 %v775_v37 }
  0xfe   :  { %3668 = vmatpush3.bf16.msra.mxu0 %v4042_v60  ;;  %v4092_v60 = vld [vmem:[#allocation5 + $0x770] sm:$0xff]  }
  0xff   :  { %3669 = vmatprep.subr.bf16.mxu0 %v4044_v62  ;;  %3690 = vmatpush3.bf16.msra.mxu1 %v4043_v61  ;;  %v4091_v62 = vld [vmem:[#allocation5 + $0x7a8] sm:$0xff]  }
 0x100   :  { %3691 = vmatprep.subr.bf16.mxu1 %v4045_v63 }
 0x102   :  { %3670 = vmatpush3.bf16.msra.mxu0 %v4046_v0 }
 0x103   :  { %3671 = vmatprep.subr.bf16.mxu0 %v4048_v2  ;;  %3692 = vmatpush3.bf16.msra.mxu1 %v4047_v1  ;;  %v4093_v2 = vld [vmem:[#allocation5 + $0x7f0] sm:$0xff]  }
 0x104   :  { %3693 = vmatprep.subr.bf16.mxu1 %v4049_v3  ;;  %v4094_v3 = vld [vmem:[#allocation5 + $0x730] sm:$0xff]  }
 0x106   :  { %3672 = vmatpush3.bf16.msra.mxu0 %v4050_v4 }
 0x107   :  { %3673 = vmatprep.subr.bf16.mxu0 %v4052_v6  ;;  %3694 = vmatpush3.bf16.msra.mxu1 %v4051_v5 }
 0x108   :  { %3695 = vmatprep.subr.bf16.mxu1 %v4053_v7 }
 0x10a   :  { %3674 = vmatpush3.bf16.msra.mxu0 %v4054_v8  ;;  %v4096_v8 = vld [vmem:[#allocation5 + $0x778] sm:$0xff]  }
 0x10b   :  { %3675 = vmatprep.subr.bf16.mxu0 %v4056_v10  ;;  %3696 = vmatpush3.bf16.msra.mxu1 %v4055_v9  ;;  %v4095_v10 = vld [vmem:[#allocation5 + $0x7b0] sm:$0xff]  }
 0x10c   :  { %3697 = vmatprep.subr.bf16.mxu1 %v4057_v11 }
 0x10e   :  { %3676 = vmatpush3.bf16.msra.mxu0 %v4058_v12  ;;  %v4097_v12 = vld [vmem:[#allocation5 + $0x7f8] sm:$0xff]  }
 0x10f   :  { %3677 = vmatprep.subr.bf16.mxu0 %v4060_v14  ;;  %3698 = vmatpush3.bf16.msra.mxu1 %v4059_v13  ;;  %v4098_v13 = vld [vmem:[#allocation5 + $0x738] sm:$0xff]   ;;  %v758_v14 = vrot.slane %v4316_v30, %v4278_v35 }
 0x110   :  { %3699 = vmatprep.subr.bf16.mxu1 %v4061_v15  ;;  %v4099_v15 = vld [vmem:[#allocation5 + $0x7b8] sm:$0xff]  }
 0x112   :  { %3678 = vmatpush3.bf16.msra.mxu0 %v4062_v16  ;;  %v774_v16 = vcombine.high %v758_v14, %v758_v14 }
 0x113   :  { %3679 = vmatprep.subr.bf16.mxu0 %v4064_v18  ;;  %3700 = vmatpush3.bf16.msra.mxu1 %v4063_v17 }
 0x114   :  { %3701 = vmatprep.subr.bf16.mxu1 %v4065_v19 }
 0x116   :  { %3680 = vmatpush3.bf16.msra.mxu0 %v4066_v20 }
 0x117   :  { %3709 = vmatprep.subr.bf16.mxu0 %v4068_v23  ;;  %3702 = vmatpush3.bf16.msra.mxu1 %v4067_v26 }
 0x118   :  { %3731 = vmatprep.subr.bf16.mxu1 %v4069_v29 }
 0x119   :  { %2858 = vmatmul.mubr.bf16.vlgmr.msra.gmra.mrb[24].mxu0 %v751_v28 }
 0x11a   :  { %3710 = vmatpush3.bf16.msra.mxu0 %v4070_v32  ;;  %2898 = vmatmul.mubr.bf16.vlgmr.msra.gmra.mrb[24].mxu1 %v773_v34 }
 0x11b   :  { %3711 = vmatprep.subr.bf16.mxu0 %v4072_v36  ;;  %3732 = vmatpush3.bf16.msra.mxu1 %v4071_v38 }
 0x11c   :  { %2937 = vmatprep.mubr.bf16.mxu0 %v772_v39  ;;  %3733 = vmatprep.subr.bf16.mxu1 %v4073_v40 }
 0x11d   :  { %2977 = vmatprep.mubr.bf16.mxu1 %v776_v42 }
 0x11e   :  { %3712 = vmatpush3.bf16.msra.mxu0 %v4074_v41 }
 0x11f   :  { %3713 = vmatprep.subr.bf16.mxu0 %v4076_v43  ;;  %3734 = vmatpush3.bf16.msra.mxu1 %v4075_v44 }
 0x120   :  { %3735 = vmatprep.subr.bf16.mxu1 %v4077_v45 }
 0x122   :  { %3714 = vmatpush3.bf16.msra.mxu0 %v4078_v46 }
 0x123   :  { %3715 = vmatprep.subr.bf16.mxu0 %v4080_v47  ;;  %3736 = vmatpush3.bf16.msra.mxu1 %v4079_v48 }
 0x124   :  { %3737 = vmatprep.subr.bf16.mxu1 %v4081_v49 }
 0x126   :  { %3716 = vmatpush3.bf16.msra.mxu0 %v4082_v50 }
 0x127   :  { %3717 = vmatprep.subr.bf16.mxu0 %v4084_v51  ;;  %3738 = vmatpush3.bf16.msra.mxu1 %v4083_v52 }
 0x128   :  { %3739 = vmatprep.subr.bf16.mxu1 %v4085_v53 }
 0x12a   :  { %3718 = vmatpush3.bf16.msra.mxu0 %v4086_v54  ;;  %v3024_v54 = vld [vmem:[#allocation7] sm:$0xff] }
 0x12b   :  { %3719 = vmatprep.subr.bf16.mxu0 %v4088_v55  ;;  %3740 = vmatpush3.bf16.msra.mxu1 %v4087_v56  ;;  %v3025_v55 = vld [vmem:[#allocation7 + $0x8] sm:$0xff] }
 0x12c   :  { %v3417_v59 = vpop.f32.mrb[0].mxu0  ;;  %3741 = vmatprep.subr.bf16.mxu1 %v4089_v57  ;;  %v3806_v56 = vpack.c.bf16 %v3025_v55, %v3024_v54  ;;  %v4207_v57 = vmov 0.0|0.0  }
 0x12d   :  { %v3418_v61 = vpop.f32.mrb[1].mxu0  ;;  %v3439_v63 = vpop.f32.mrb[0].mxu1 }
 0x12e   :  { %v3419_v0 = vadd.f32 %v3418_v61, %v3417_v59  ;;  %v3420_v1 = vpop.f32.mrb[2].mxu0  ;;  %v3440_v4 = vpop.f32.mrb[1].mxu1  ;;  %3720 = vmatpush3.bf16.msra.mxu0 %v4090_v58  ;;  %v3026_v58 = vld [vmem:[#allocation7 + $0x10] sm:$0xff]  ;;  %v3027_v59 = vld [vmem:[#allocation7 + $0x18] sm:$0xff]  ;;  %v3028_v61 = vld [vmem:[#allocation7 + $0x20] sm:$0xff] }
 0x12f   :  { %v3421_v5 = vpop.f32.mrb[3].mxu0  ;;  %v3441_v6 = vadd.f32 %v3440_v4, %v3439_v63  ;;  %v3442_v7 = vpop.f32.mrb[2].mxu1  ;;  %3721 = vmatprep.subr.bf16.mxu0 %v4092_v60  ;;  %3742 = vmatpush3.bf16.msra.mxu1 %v4091_v62  ;;  %v3809_v60 = vpack.c.bf16 %v3027_v59, %v3026_v58  ;;  %v3029_v62 = vld [vmem:[#allocation7 + $0x28] sm:$0xff] }
 0x130   :  { %v3443_v9 = vpop.f32.mrb[3].mxu1  ;;  %3743 = vmatprep.subr.bf16.mxu1 %v4093_v2  ;;  %v3812_v63 = vpack.c.bf16 %v3029_v62, %v3028_v61  ;;  %v3030_v2 = vld [vmem:[#allocation7 + $0x30] sm:$0xff] }
 0x131   :  { %v2420_v11 = vadd.f32 %v3441_v6, %v3419_v0 }
 0x132   :  { %3722 = vmatpush3.bf16.msra.mxu0 %v4094_v3  ;;  %v3031_v3 = vld [vmem:[#allocation7 + $0x38] sm:$0xff] }
 0x133   :  { %3723 = vmatprep.subr.bf16.mxu0 %v4096_v8  ;;  %3744 = vmatpush3.bf16.msra.mxu1 %v4095_v10  ;;  %v3815_v7 = vpack.c.bf16 %v3031_v3, %v3030_v2 }
 0x134   :  { %3745 = vmatprep.subr.bf16.mxu1 %v4097_v12 }
 0x136   :  { %3724 = vmatpush3.bf16.msra.mxu0 %v4098_v13 }
 0x137   :  { %3746 = vmatpush3.bf16.msra.mxu1 %v4099_v15  ;;  %3805 = vmatprep.subr.bf16.mxu0 %v4207_v57  ;;  %v3033_v15 = vld [vmem:[#allocation7 + $0x48] sm:$0xff] }
 0x139   :  { %2938 = vmatmul.mubr.bf16.vlgmr.msra.gmra.mrb[28].mxu0 %v758_v14  ;;  %v3032_v14 = vld [vmem:[#allocation7 + $0x40] sm:$0xff] }
 0x13a   :  { %2978 = vmatmul.mubr.bf16.vlgmr.msra.gmra.mrb[28].mxu1 %v774_v16  ;;  %3807 = vmatpush3.bf16.msra.mxu0 %v3806_v56 }
 0x13b   :  { %3808 = vmatprep.subr.bf16.mxu0 %v4207_v57 }
 0x13e   :  { %3810 = vmatpush3.bf16.msra.mxu0 %v3809_v60 }
 0x13f   :  { %3811 = vmatprep.subr.bf16.mxu0 %v4207_v57 }
 0x142   :  { %3813 = vmatpush3.bf16.msra.mxu0 %v3812_v63 }
 0x143   :  { %3814 = vmatprep.subr.bf16.mxu0 %v4207_v57 }
 0x146   :  { %3816 = vmatpush3.bf16.msra.mxu0 %v3815_v7 }
 0x147   :  { %3817 = vmatprep.subr.bf16.mxu0 %v4207_v57 }
 0x14c   :  { %v3461_v17 = vpop.f32.mrb[4].mxu0 }
 0x14d   :  { %v3462_v18 = vpop.f32.mrb[5].mxu0  ;;  %v3483_v19 = vpop.f32.mrb[4].mxu1 }
 0x14e   :  { %v3463_v20 = vadd.f32 %v3462_v18, %v3461_v17  ;;  %v3464_v21 = vpop.f32.mrb[6].mxu0  ;;  %v3484_v22 = vpop.f32.mrb[5].mxu1  ;;  %v3818_v17 = vpack.c.bf16 %v3033_v15, %v3032_v14  ;;  %v3034_v18 = vld [vmem:[#allocation7 + $0x50] sm:$0xff] }
 0x14f   :  { %v3465_v23 = vpop.f32.mrb[7].mxu0  ;;  %v3485_v26 = vadd.f32 %v3484_v22, %v3483_v19  ;;  %v3486_v27 = vpop.f32.mrb[6].mxu1  ;;  %v3035_v19 = vld [vmem:[#allocation7 + $0x58] sm:$0xff]  ;;  %v3036_v21 = vld [vmem:[#allocation7 + $0x60] sm:$0xff]  ;;  %v3037_v22 = vld [vmem:[#allocation7 + $0x68] sm:$0xff] }
 0x150   :  { %v2460_v25 = vadd.f32 %v3463_v20, %v2420_v11  ;;  %v3487_v28 = vpop.f32.mrb[7].mxu1  ;;  %3819 = vmatpush3.bf16.msra.mxu0 %v3818_v17  ;;  %v3821_v20 = vpack.c.bf16 %v3035_v19, %v3034_v18  ;;  %v3038_v23 = vld [vmem:[#allocation7 + $0x70] sm:$0xff]  ;;  %v4209_v27 = vmov 0.0  }
 0x151   :  { %3820 = vmatprep.subr.bf16.mxu0 %v4207_v57  ;;  %3802 = vmatprep.mubr.msk.f32.mxu0 %vm4208_vm0, %v4209_v27  ;;  %v3399_v27 = vld [vmem:[%s4348_s2 + $0x1] ss:$0 sm:$0xff] }
 0x152   :  { %v2500_v35 = vadd.f32 %v3485_v26, %v2460_v25  ;;  %v3824_v25 = vpack.c.bf16 %v3037_v22, %v3036_v21  ;;  %v3039_v26 = vld [vmem:[#allocation7 + $0x78] sm:$0xff] }
 0x153   :  { %v3827_v28 = vpack.c.bf16 %v3039_v26, %v3038_v23 }
 0x154   :  { %3822 = vmatpush3.bf16.msra.mxu0 %v3821_v20 }
 0x155   :  { %3823 = vmatprep.subr.bf16.mxu0 %v4207_v57 }
 0x158   :  { %3825 = vmatpush3.bf16.msra.mxu0 %v3824_v25  ;;  %v3398_v25 = vld [vmem:[%s4348_s2] ss:$0 sm:$0xff]  ;;  %s3132_s2 = sshll.u32 %s4210_s11, 4  ;;  %s3133_s2 = int_to_ptr.vmem [resolvable:$true] %s3132_s2 }
 0x159   :  { %3826 = vmatprep.subr.bf16.mxu0 %v4207_v57  ;;  %s4171_s12 = scalar_lea.vmem %s3133_s2, 32  ;;  %p4176_p11 = scmp.lt.s32.totalorder %s3133_s2, %s3133_s2 }
 0x15a   :  { %p4172_p10 = scmp.ne.s32.totalorder %s3133_s2, %s4171_s12  ;;  %p4177_p12 = scmp.lt.s32.totalorder %s4171_s12, %s4171_s12 }
 0x15c   :  { %3828 = vmatpush3.bf16.msra.mxu0 %v3827_v28  ;;  %p4178_p13 = por %p4177_p12, %p4176_p11 }
 0x15e   :  { %p4179_p0 = pnand %p4178_p13, %p4172_p10 }
 0x16c   :  { %v3505_v29 = vpop.f32.mrb[8].mxu0 }
 0x16d   :  { %v3506_v30 = vpop.f32.mrb[9].mxu0  ;;  %v3527_v31 = vpop.f32.mrb[8].mxu1 }
 0x16e   :  { %v3507_v32 = vadd.f32 %v3506_v30, %v3505_v29  ;;  %v3508_v33 = vpop.f32.mrb[10].mxu0  ;;  %v3528_v34 = vpop.f32.mrb[9].mxu1 }
 0x16f   :  { %v3509_v36 = vpop.f32.mrb[11].mxu0  ;;  %v3529_v38 = vadd.f32 %v3528_v34, %v3527_v31  ;;  %v3530_v39 = vpop.f32.mrb[10].mxu1 }
 0x170   :  { %v2540_v37 = vadd.f32 %v3507_v32, %v2500_v35  ;;  %v3531_v40 = vpop.f32.mrb[11].mxu1 }
 0x172   :  { %v2580_v41 = vadd.f32 %v3529_v38, %v2540_v37 }
 0x18c   :  { %v3549_v42 = vpop.f32.mrb[12].mxu0 }
 0x18d   :  { %v3550_v43 = vpop.f32.mrb[13].mxu0  ;;  %v3571_v44 = vpop.f32.mrb[12].mxu1 }
 0x18e   :  { %v3551_v45 = vadd.f32 %v3550_v43, %v3549_v42  ;;  %v3552_v46 = vpop.f32.mrb[14].mxu0  ;;  %v3572_v47 = vpop.f32.mrb[13].mxu1 }
 0x18f   :  { %v3553_v48 = vpop.f32.mrb[15].mxu0  ;;  %v3573_v50 = vadd.f32 %v3572_v47, %v3571_v44  ;;  %v3574_v51 = vpop.f32.mrb[14].mxu1 }
 0x190   :  { %v2620_v49 = vadd.f32 %v3551_v45, %v2580_v41  ;;  %v3575_v52 = vpop.f32.mrb[15].mxu1 }
 0x192   :  { %v2660_v53 = vadd.f32 %v3573_v50, %v2620_v49 }
 0x1ac   :  { %v3593_v0 = vpop.f32.mrb[16].mxu0 }
 0x1ad   :  { %v3594_v1 = vpop.f32.mrb[17].mxu0  ;;  %v3615_v4 = vpop.f32.mrb[16].mxu1 }
 0x1ae   :  { %v3595_v5 = vadd.f32 %v3594_v1, %v3593_v0  ;;  %v3596_v6 = vpop.f32.mrb[18].mxu0  ;;  %v3616_v8 = vpop.f32.mrb[17].mxu1 }
 0x1af   :  { %v3597_v9 = vpop.f32.mrb[19].mxu0  ;;  %v3617_v11 = vadd.f32 %v3616_v8, %v3615_v4  ;;  %v3618_v12 = vpop.f32.mrb[18].mxu1 }
 0x1b0   :  { %v2700_v10 = vadd.f32 %v3595_v5, %v2660_v53  ;;  %v3619_v13 = vpop.f32.mrb[19].mxu1 }
 0x1b2   :  { %v2740_v16 = vadd.f32 %v3617_v11, %v2700_v10 }
 0x1cc   :  { %v3637_v35 = vpop.f32.mrb[20].mxu0 }
 0x1cd   :  { %v3638_v29 = vpop.f32.mrb[21].mxu0  ;;  %v3659_v30 = vpop.f32.mrb[20].mxu1 }
 0x1ce   :  { %v3639_v31 = vadd.f32 %v3638_v29, %v3637_v35  ;;  %v3640_v32 = vpop.f32.mrb[22].mxu0  ;;  %v3660_v33 = vpop.f32.mrb[21].mxu1 }
 0x1cf   :  { %v3641_v34 = vpop.f32.mrb[23].mxu0  ;;  %v3661_v37 = vadd.f32 %v3660_v33, %v3659_v30  ;;  %v3662_v38 = vpop.f32.mrb[22].mxu1 }
 0x1d0   :  { %v2780_v36 = vadd.f32 %v3639_v31, %v2740_v16  ;;  %v3663_v39 = vpop.f32.mrb[23].mxu1  ;;  %v3400_v31 = vld [vmem:[%s4350_s4] ss:$0 sm:$0xff] }
 0x1d2   :  { %v2820_v40 = vadd.f32 %v3661_v37, %v2780_v36  ;;  %v3118_v37 = vand.u32 127, %v585_v24 }
 0x1d4   :  { %vm3119_vm2 = vcmp.ge.s32.totalorder %v3118_v37, 12  ;;  %vm3120_vm3 = vcmp.lt.s32.totalorder %v3118_v37, 14 }
 0x1d5   :  { %vm3121_vm4 = vmand %vm3119_vm2, %vm3120_vm3 }
 0x1ec   :  { %v3681_v41 = vpop.f32.mrb[24].mxu0 }
 0x1ed   :  { %v3682_v42 = vpop.f32.mrb[25].mxu0  ;;  %v3703_v43 = vpop.f32.mrb[24].mxu1 }
 0x1ee   :  { %v3683_v44 = vadd.f32 %v3682_v42, %v3681_v41  ;;  %v3684_v45 = vpop.f32.mrb[26].mxu0  ;;  %v3704_v46 = vpop.f32.mrb[25].mxu1 }
 0x1ef   :  { %v3685_v47 = vpop.f32.mrb[27].mxu0  ;;  %v3705_v49 = vadd.f32 %v3704_v46, %v3703_v43  ;;  %v3706_v50 = vpop.f32.mrb[26].mxu1 }
 0x1f0   :  { %v2860_v48 = vadd.f32 %v3683_v44, %v2820_v40  ;;  %v3707_v51 = vpop.f32.mrb[27].mxu1 }
 0x1f2   :  { %v2900_v52 = vadd.f32 %v3705_v49, %v2860_v48 }
 0x20c   :  { %v3725_v53 = vpop.f32.mrb[28].mxu0 }
 0x20d   :  { %v3726_v54 = vpop.f32.mrb[29].mxu0  ;;  %v3747_v55 = vpop.f32.mrb[28].mxu1 }
 0x20e   :  { %v3727_v56 = vadd.f32 %v3726_v54, %v3725_v53  ;;  %v3728_v57 = vpop.f32.mrb[30].mxu0  ;;  %v3748_v58 = vpop.f32.mrb[29].mxu1 }
 0x20f   :  { %v3729_v59 = vpop.f32.mrb[31].mxu0  ;;  %v3749_v61 = vadd.f32 %v3748_v58, %v3747_v55  ;;  %v3750_v62 = vpop.f32.mrb[30].mxu1 }
 0x210   :  { %v2940_v60 = vadd.f32 %v3727_v56, %v2900_v52  ;;  %v3751_v63 = vpop.f32.mrb[31].mxu1 }
 0x212   :  { %v2980_v0 = vadd.f32 %v3749_v61, %v2940_v60 }
 0x214   :  { %v2986_v1 = vsel %vm2985_vm1, %v2980_v0, 0.0  ;;  %v2994_v2 = vmul.f32 %v2980_v0, %v2980_v0 }
 0x215   :  { %v2987_v3 = vrot.slane %v2986_v1, 4 }
 0x216   :  { %v2995_v4 = vsel %vm2985_vm1, %v2994_v2, 0.0 }
 0x217   :  { %v2988_v5 = vadd.f32 %v2987_v3, %v2986_v1  ;;  %v2996_v6 = vrot.slane %v2995_v4, 4 }
 0x219   :  { %v2989_v7 = vrot.slane %v2988_v5, 2  ;;  %v2997_v8 = vadd.f32 %v2996_v6, %v2995_v4 }
 0x21b   :  { %v2990_v9 = vadd.f32 %v2989_v7, %v2988_v5  ;;  %v2998_v10 = vrot.slane %v2997_v8, 2 }
 0x21d   :  { %v2991_v11 = vrot.slane %v2990_v9, 1  ;;  %v2999_v12 = vadd.f32 %v2998_v10, %v2997_v8 }
 0x21f   :  { %v2992_v13 = vadd.f32 %v2991_v11, %v2990_v9  ;;  %v3000_v14 = vrot.slane %v2999_v12, 1 }
 0x221   :  { %v2993_v15 = vmul.f32 0.5, %v2992_v13  ;;  %v3001_v16 = vadd.f32 %v3000_v14, %v2999_v12 }
 0x223   :  { %v3002_v17 = vmul.f32 0.5, %v3001_v16  ;;  %v3003_v18 = vmul.f32 %v2993_v15, %v2993_v15  ;;  %v3006_v22 = vsub.f32 %v2980_v0, %v2993_v15 }
 0x225   :  { %v3004_v19 = vsub.f32 %v3002_v17, %v3003_v18 }
 0x227   :  { %v3005_v20 = vmax.f32 %v3004_v19, 0.0 }
 0x229   :  { %v3007_v21 = vadd.f32 1e-05, %v3005_v20 }
 0x22b   :  { %4101 = vrsqrt.f32 %v3007_v21 }
 0x235   :  { %v4102_v23 = vpop.eup %4101 }
 0x236   :  { %v3009_v26 = vmul.f32 %v4102_v23, %v3006_v22 }
 0x238   :  { %v3015_v28 = vmul.f32 %v3398_v25, %v3009_v26 }
 0x23a   :  { %v3021_v35 = vadd.f32 %v3399_v27, %v3015_v28 }
 0x23c   :  { %v3022_v29 = vmul.f32 0.1, %v3021_v35 }
 0x23e   :  { %v3023_v30 = vmax.f32 %v3021_v35, %v3022_v29 }
 0x240   :  { %3803 = vmatmul.mubr.f32.vlgmr.msra.gmra.mrb[32].mxu0 %v3023_v30 }
 0x313   :  { %v3113_v32 = vpop.f32.mrb[32].mxu0 }
 0x314   :  { %v3114_v33 = vadd.f32 %v3400_v31, %v3113_v32  ;;  %v3804_v34 = vpop.f32.mrb[33].mxu0 }
 0x316   :  { %v3122_v36 = vmul.f32 1.442695, %v3114_v33 }
 0x318   :  { %4103 = vpow2.f32 %v3122_v36 }
 0x322   :  { %v4104_v38 = vpop.eup %4103 }
 0x323   :  { %v3124_v39 = vsel %vm3121_vm4, %v4104_v38, %v3114_v33 }
 0x324   :  { %3125 = vst [vmem:[#allocation8] sm:$0x3] %v3124_v39 }
 0x325   :  { %4182 = shalt.err (!%p4179_p0)
}
 0x326   :  { %s4183_s14 = scalar_lea.hbm %s4351_s5, 32 }
 0x327   :  { %p4184_p1 = scmp.ne.s32.totalorder %s4351_s5, %s4183_s14  ;;  %p4187_p2 = scmp.lt.u32.totalorder %s4183_s14, %s4351_s5 }
 0x329   :  { %p4189_p3 = pnand %p4187_p2, %p4184_p1 }
 0x32b   :  { %4192 = shalt.err (!%p4189_p3)
}
 0x32c   :  { %3135 = dma.vmem_to_hbm [thread:$0]  %s3133_s2, 32, %s4351_s5, [#allocation4]  }
 0x32d   :  { %4197 = dma.done.wait [#allocation4], 32  }
 0x32e   :  { %4198 = vsyncadd [#allocation4], 4294967264 }
 0x32f   :  { %3139 = vsyncpa [#allocation3], 1 }
 0x330   :  { %3140 = vsyncpa [#allocation6], 1 }
 0x331   :  { %3141 = vsyncpa [#allocation4], 1 }

</bundles_post_ra>
